<compile_context>
chip_gen: v6e
topology: v6e:2x2x1
jax: 0.10.0
libtpu: 0.0.40
codegen_flags: <defaults>
</compile_context>

<pallas_src>
import functools
import math

import jax
import jax.numpy as jnp
from jax import lax
from jax.experimental import pallas as pl
from jax.experimental.pallas import tpu as pltpu


def autopad(k, p=None, d=1):
    """Same autopad as the PyTorch reference."""
    if d > 1:
        k = d * (k - 1) + 1 if isinstance(k, int) else [d * (x - 1) + 1 for x in k]
    if p is None:
        p = k // 2 if isinstance(k, int) else [x // 2 for x in k]
    return p


def _round_up(x, m):
    return ((x + m - 1) // m) * m


def _largest_divisor_tile(total, cap):
    """Largest multiple of 128 <= cap that divides `total` (total % 128 == 0)."""
    if total <= cap:
        return total
    t = (cap // 128) * 128
    while t > 128:
        if total % t == 0:
            return t
        t -= 128
    return 128


# ----------------------------- Pallas kernel ----------------------------------


def _fused_conv_epilogue_kernel(a_ref, w_ref, sb_ref, *refs, has_residual,
                                use_scratch):
    """One (TM, TN) output tile of SiLU(BN(A @ W)) [+ residual].

    Grid = (M_tiles, N_tiles, K_tiles); K is the last ("arbitrary") axis.
      a_ref:  (TM, TK) bf16 im2col patches
      w_ref:  (TK, TN) bf16 weights
      sb_ref: (2,  TN) f32  row 0 = folded BN scale, row 1 = folded BN bias
      [r_ref: (TM, TN) bf16 residual]          (if has_residual)
      o_ref:  (TM, TN) output (f32 or bf16)
      [acc_ref: (TM, TN) f32 scratch]          (if use_scratch; else acc == o_ref)
    """
    if has_residual:
        r_ref, *refs = refs
    o_ref, *refs = refs
    acc_ref = refs[0] if use_scratch else o_ref

    @pl.when(pl.program_id(2) == 0)
    def _():
        acc_ref[...] = jnp.zeros_like(acc_ref)

    acc_ref[...] += jnp.dot(a_ref[...], w_ref[...],
                            preferred_element_type=jnp.float32)

    @pl.when(pl.program_id(2) == pl.num_programs(2) - 1)
    def _():
        sb = sb_ref[...]
        y = acc_ref[...] * sb[0:1, :] + sb[1:2, :]
        y = y * jax.nn.sigmoid(y)
        if has_residual:
            y = y + r_ref[...].astype(jnp.float32)
        o_ref[...] = y.astype(o_ref.dtype)


def _fused_matmul_bn_silu(a, w, sb, residual=None, *, out_dtype=jnp.float32,
                          tm, tn, tk):
    """Tiled fused matmul + BN affine + SiLU (+ residual). Inputs pre-padded."""
    M, K = a.shape
    _, Cout = w.shape
    assert M % tm == 0 and Cout % tn == 0 and K % tk == 0, (M, K, Cout, tm, tn, tk)
    grid = (M // tm, Cout // tn, K // tk)

    has_residual = residual is not None
    use_scratch = jnp.dtype(out_dtype) != jnp.dtype(jnp.float32)

    in_specs = [
        pl.BlockSpec((tm, tk), lambda i, j, k: (i, k)),
        pl.BlockSpec((tk, tn), lambda i, j, k: (k, j)),
        # scale/bias depend only on the Cout axis -> no re-DMA per i/k step.
        pl.BlockSpec((2, tn), lambda i, j, k: (0, j)),
    ]
    args = [a, w, sb]
    if has_residual:
        in_specs.append(pl.BlockSpec((tm, tn), lambda i, j, k: (i, j)))
        args.append(residual)

    scratch_shapes = []
    if use_scratch:
        scratch_shapes.append(pltpu.VMEM((tm, tn), jnp.float32))

    # Working-set estimate: double-buffered inputs/outputs + accumulator,
    # kept with headroom against v7x's 64 MiB/TC physical VMEM.
    out_bytes = tm * tn * jnp.dtype(out_dtype).itemsize
    vmem_bytes = (2 * (tm * tk * a.dtype.itemsize
                       + tk * tn * w.dtype.itemsize
                       + 2 * tn * 4)
                  + 2 * out_bytes
                  + (tm * tn * 4 if use_scratch else 0))
    if has_residual:
        vmem_bytes += 2 * tm * tn * residual.dtype.itemsize
    vmem_limit = int(min(max(int(1.5 * vmem_bytes), 16 * 1024 * 1024),
                         48 * 1024 * 1024))

    kernel = functools.partial(_fused_conv_epilogue_kernel,
                               has_residual=has_residual,
                               use_scratch=use_scratch)

    return pl.pallas_call(
        kernel,
        out_shape=jax.ShapeDtypeStruct((M, Cout), out_dtype),
        grid_spec=pltpu.PrefetchScalarGridSpec(
            num_scalar_prefetch=0,
            grid=grid,
            in_specs=in_specs,
            out_specs=pl.BlockSpec((tm, tn), lambda i, j, k: (i, j)),
            scratch_shapes=scratch_shapes,
        ),
        compiler_params=pltpu.CompilerParams(
            dimension_semantics=("parallel", "parallel", "arbitrary"),
            vmem_limit_bytes=vmem_limit,
        ),
    )(*args)


# --------------------------- Conv (NHWC) wrapper ------------------------------


def _conv_bn_silu_nhwc(x_nhwc, weight_oihw, gamma, beta, mean, var,
                       k, s, p, eps=1e-5, residual_nhwc=None,
                       out_dtype=jnp.float32):
    """SiLU(BN(Conv2d(x))) [+ residual], NHWC in / NHWC out."""
    N, H, W, C_in = x_nhwc.shape
    C_out = weight_oihw.shape[0]
    Ho = (H + 2 * p - (k - 1) - 1) // s + 1
    Wo = (W + 2 * p - (k - 1) - 1) // s + 1

    # im2col built directly in bf16 (cast before pad/concat) so the largest HBM
    # intermediate is written + read once at half width.
    x_bf = x_nhwc.astype(jnp.bfloat16)
    xp = jnp.pad(x_bf, ((0, 0), (p, p), (p, p), (0, 0)))
    patches = []
    for dh in range(k):
        for dw in range(k):
            patches.append(
                lax.slice(
                    xp,
                    (0, dh, dw, 0),
                    (N, dh + (Ho - 1) * s + 1, dw + (Wo - 1) * s + 1, C_in),
                    (1, s, s, 1),
                ))
    a = jnp.concatenate(patches, axis=-1).reshape(N * Ho * Wo, k * k * C_in)

    # weight (C_out, C_in, kh, kw) -> (kh, kw, C_in, C_out) -> (k*k*C_in, C_out)
    wmat = jnp.transpose(weight_oihw, (2, 3, 1, 0)).reshape(k * k * C_in, C_out)

    # fold eval-mode BN into per-channel scale/bias; pack as one (2, Cout) array.
    inv_std = gamma / jnp.sqrt(var + eps)
    scale = inv_std.reshape(1, C_out).astype(jnp.float32)
    bias = (beta - mean * inv_std).reshape(1, C_out).astype(jnp.float32)
    sb = jnp.concatenate([scale, bias], axis=0)

    # pad to MXU/lane-friendly multiples
    M = N * Ho * Wo
    K = k * k * C_in
    K_pad = _round_up(K, 128)
    N_pad = _round_up(C_out, 128)

    # ---- tile selection (per perf review) ----
    tn = _largest_divisor_tile(N_pad, 512)
    tk = _largest_divisor_tile(K_pad, 256)
    n_cout_tiles = N_pad // tn
    if M >= 2048:
        tm = 1024
    elif M >= 1024:
        tm = 512
    elif M >= 512:
        # keep >=2 parallel tiles so both v7x TensorCores get work
        tm = 512 if n_cout_tiles >= 2 else 256
    else:
        tm = _round_up(M, 16)      # multiple of 16: clean bf16 sublane packing
    M_pad = _round_up(M, tm)

    a_p = jnp.pad(a, ((0, M_pad - M), (0, K_pad - K)))
    w_p = jnp.pad(wmat, ((0, K_pad - K), (0, N_pad - C_out))).astype(jnp.bfloat16)
    sb_p = jnp.pad(sb, ((0, 0), (0, N_pad - C_out)))

    res_p = None
    if residual_nhwc is not None:
        r = residual_nhwc.reshape(M, C_out).astype(jnp.bfloat16)
        res_p = jnp.pad(r, ((0, M_pad - M), (0, N_pad - C_out)))

    out = _fused_matmul_bn_silu(a_p, w_p, sb_p, res_p, out_dtype=out_dtype,
                                tm=tm, tn=tn, tk=tk)
    return out[:M, :C_out].reshape(N, Ho, Wo, C_out)


# ----------------------------- Bottleneck forward -----------------------------


@functools.partial(jax.jit, static_argnames=("shortcut", "k"))
def bottleneck_forward(x_nchw, w1, g1, b1, m1, v1, w2, g2, b2, m2, v2,
                       shortcut=True, k=(3, 3)):
    """Bottleneck.forward: x + cv2(cv1(x)) if shortcut and c1 == c2 else cv2(cv1(x))."""
    # TODO(synk): groups > 1 (g != 1) and dilation > 1 are not implemented.
    # TODO(synk): keep the surrounding net NHWC end-to-end to drop these transposes.
    c1 = x_nchw.shape[1]
    c2 = w2.shape[0]
    add = shortcut and (c1 == c2)

    x = jnp.transpose(x_nchw, (0, 2, 3, 1))  # NCHW -> NHWC
    p1 = autopad(k[0])
    p2 = autopad(k[1])

    # cv1 output only feeds cv2's bf16 matmul -> emit it as bf16 from the epilogue.
    y = _conv_bn_silu_nhwc(x, w1, g1, b1, m1, v1, k=k[0], s=1, p=p1,
                           out_dtype=jnp.bfloat16)
    y = _conv_bn_silu_nhwc(y, w2, g2, b2, m2, v2, k=k[1], s=1, p=p2,
                           residual_nhwc=x if add else None,
                           out_dtype=jnp.float32)
    return jnp.transpose(y, (0, 3, 1, 2))    # NHWC -> NCHW


# --------------------------------- reference ----------------------------------


def _conv_ref(x, w, gamma, beta, mean, var, k, s, p, eps=1e-5):
    y = lax.conv_general_dilated(
        x, w, window_strides=(s, s), padding=[(p, p), (p, p)],
        dimension_numbers=("NCHW", "OIHW", "NCHW"))
    y = (y - mean[None, :, None, None]) / jnp.sqrt(var[None, :, None, None] + eps)
    y = y * gamma[None, :, None, None] + beta[None, :, None, None]
    return y * jax.nn.sigmoid(y)


def bottleneck_ref(x, w1, g1, b1, m1, v1, w2, g2, b2, m2, v2, shortcut, k):
    p1 = autopad(k[0])
    p2 = autopad(k[1])
    y = _conv_ref(x, w1, g1, b1, m1, v1, k[0], 1, p1)
    y = _conv_ref(y, w2, g2, b2, m2, v2, k[1], 1, p2)
    add = shortcut and x.shape[1] == w2.shape[0]
    return x + y if add else y


# ----------------------------------- main --------------------------------------

if __name__ == "__main__":
    # Bottleneck(c1=4, c2=4, shortcut=True, k=(3,3), e=0.5) -> c_ = 2, residual add
    N, C1, H, W = 2, 4, 16, 16
    C2, E = 4, 0.5
    C_ = int(C2 * E)
    K1 = K2 = 3

    key = jax.random.PRNGKey(0)
    ks = jax.random.split(key, 11)

    x = jax.random.normal(ks[0], (N, C1, H, W), dtype=jnp.float32)

    # cv1: Conv(c1 -> c_, k=3), bias=False; kaiming-ish init
    w1 = jax.random.normal(ks[1], (C_, C1, K1, K1), jnp.float32) * math.sqrt(2.0 / (C1 * K1 * K1))
    g1 = 1.0 + 0.1 * jax.random.normal(ks[2], (C_,), jnp.float32)
    b1 = 0.1 * jax.random.normal(ks[3], (C_,), jnp.float32)
    m1 = 0.1 * jax.random.normal(ks[4], (C_,), jnp.float32)
    v1 = jnp.abs(jax.random.normal(ks[5], (C_,), jnp.float32)) + 0.5

    # cv2: Conv(c_ -> c2, k=3), bias=False
    w2 = jax.random.normal(ks[6], (C2, C_, K2, K2), jnp.float32) * math.sqrt(2.0 / (C_ * K2 * K2))
    g2 = 1.0 + 0.1 * jax.random.normal(ks[7], (C2,), jnp.float32)
    b2 = 0.1 * jax.random.normal(ks[8], (C2,), jnp.float32)
    m2 = 0.1 * jax.random.normal(ks[9], (C2,), jnp.float32)
    v2 = jnp.abs(jax.random.normal(ks[10], (C2,), jnp.float32)) + 0.5

    out = bottleneck_forward(x, w1, g1, b1, m1, v1, w2, g2, b2, m2, v2,
                             shortcut=True, k=(3, 3))
    out = jax.block_until_ready(out)

    ref = bottleneck_ref(x, w1, g1, b1, m1, v1, w2, g2, b2, m2, v2, True, (3, 3))
    assert out.shape == (N, C2, H, W), out.shape
    max_err = float(jnp.max(jnp.abs(out - ref)))
    # bf16 matmul operands / bf16 intermediate with f32 accumulation -> relaxed
    # tolerance vs the f32 reference.
    assert jnp.allclose(out, ref, atol=5e-2, rtol=5e-2), max_err

    print("KERNEL_OK")
</pallas_src>

<mosaic_0001>
module attributes {stable_mosaic.version = 11 : i64} {
  func.func @_fused_conv_epilogue_kernel(%arg0: i32, %arg1: i32, %arg2: i32, %arg3: memref<256x128xbf16, #tpu.memory_space<vmem>>, %arg4: memref<128x128xbf16, #tpu.memory_space<vmem>>, %arg5: memref<2x128xf32, #tpu.memory_space<vmem>>, %arg6: memref<256x128xbf16, #tpu.memory_space<vmem>>, %arg7: memref<256x128xf32, #tpu.memory_space<vmem>>) attributes {dimension_semantics = [#tpu.dimension_semantics<parallel>, #tpu.dimension_semantics<parallel>, #tpu.dimension_semantics<arbitrary>], iteration_bounds = array<i64: 2, 1, 1>, scalar_prefetch = 0 : i64, scratch_operands = 1 : i64, tpu.core_type = #tpu.core_type<tc>, window_params = [{transform_indices = @transform_0, window_bounds = array<i64: 256, 128>}, {transform_indices = @transform_1, window_bounds = array<i64: 128, 128>}, {transform_indices = @transform_2, window_bounds = array<i64: 2, 128>}, {transform_indices = @transform_3, window_bounds = array<i64: 256, 128>}]} {
    %c0_i32 = arith.constant 0 : i32
    %0 = arith.cmpi eq, %arg2, %c0_i32 : i32
    %1 = arith.extui %0 : i1 to i32
    %c0_i32_0 = arith.constant 0 : i32
    %2 = arith.cmpi ne, %1, %c0_i32_0 : i32
    scf.if %2 {
      %cst_10 = arith.constant 0.000000e+00 : f32
      %12 = vector.broadcast %cst_10 : f32 to vector<256x128xf32>
      %c0_11 = arith.constant 0 : index
      %c0_12 = arith.constant 0 : index
      %13 = vector.load %arg7[%c0_11, %c0_12] : memref<256x128xf32, #tpu.memory_space<vmem>>, vector<256x128xf32>
      tpu.vector_store %arg7[%c0_11, %c0_12], %12 {strides = array<i32>} : memref<256x128xf32, #tpu.memory_space<vmem>>, vector<256x128xf32>,
    } else {
    }
    %c0 = arith.constant 0 : index
    %c0_1 = arith.constant 0 : index
    %3 = vector.load %arg7[%c0, %c0_1] : memref<256x128xf32, #tpu.memory_space<vmem>>, vector<256x128xf32>
    %c0_2 = arith.constant 0 : index
    %c0_3 = arith.constant 0 : index
    %4 = vector.load %arg3[%c0_2, %c0_3] : memref<256x128xbf16, #tpu.memory_space<vmem>>, vector<256x128xbf16>
    %c0_4 = arith.constant 0 : index
    %c0_5 = arith.constant 0 : index
    %5 = vector.load %arg4[%c0_4, %c0_5] : memref<128x128xbf16, #tpu.memory_space<vmem>>, vector<128x128xbf16>
    %cst = arith.constant dense<0.000000e+00> : vector<256x128xf32>
    %6 = tpu.matmul %4, %5, %cst {dimension_numbers = #tpu.dot_dimension_numbers<[1], [0], [0], [1], [0, 0, 1, 1], [], []>} : vector<256x128xbf16>, vector<128x128xbf16>, vector<256x128xf32> -> vector<256x128xf32>
    %7 = arith.addf %3, %6 : vector<256x128xf32>
    %c0_6 = arith.constant 0 : index
    %c0_7 = arith.constant 0 : index
    %8 = vector.load %arg7[%c0_6, %c0_7] : memref<256x128xf32, #tpu.memory_space<vmem>>, vector<256x128xf32>
    tpu.vector_store %arg7[%c0_6, %c0_7], %7 {strides = array<i32>} : memref<256x128xf32, #tpu.memory_space<vmem>>, vector<256x128xf32>,
    %c0_i32_8 = arith.constant 0 : i32
    %9 = arith.cmpi eq, %arg2, %c0_i32_8 : i32
    %10 = arith.extui %9 : i1 to i32
    %c0_i32_9 = arith.constant 0 : i32
    %11 = arith.cmpi ne, %10, %c0_i32_9 : i32
    scf.if %11 {
      %c0_10 = arith.constant 0 : index
      %c0_11 = arith.constant 0 : index
      %12 = vector.load %arg5[%c0_10, %c0_11] : memref<2x128xf32, #tpu.memory_space<vmem>>, vector<2x128xf32>
      %c0_12 = arith.constant 0 : index
      %c0_13 = arith.constant 0 : index
      %13 = vector.load %arg7[%c0_12, %c0_13] : memref<256x128xf32, #tpu.memory_space<vmem>>, vector<256x128xf32>
      %14 = vector.extract_strided_slice %12 {offsets = [0, 0], sizes = [1, 128], strides = [1, 1]} : vector<2x128xf32> to vector<1x128xf32>
      %15 = vector.broadcast %14 : vector<1x128xf32> to vector<256x128xf32>
      %16 = arith.mulf %13, %15 : vector<256x128xf32>
      %17 = vector.extract_strided_slice %12 {offsets = [1, 0], sizes = [1, 128], strides = [1, 1]} : vector<2x128xf32> to vector<1x128xf32>
      %18 = vector.broadcast %17 : vector<1x128xf32> to vector<256x128xf32>
      %19 = arith.addf %16, %18 : vector<256x128xf32>
      %20 = arith.negf %19 : vector<256x128xf32>
      %21 = math.exp %20 : vector<256x128xf32>
      %cst_14 = arith.constant 1.000000e+00 : f32
      %22 = vector.broadcast %cst_14 : f32 to vector<256x128xf32>
      %23 = arith.addf %22, %21 : vector<256x128xf32>
      %24 = arith.divf %22, %23 : vector<256x128xf32>
      %25 = arith.mulf %19, %24 : vector<256x128xf32>
      %26 = arith.truncf %25 : vector<256x128xf32> to vector<256x128xbf16>
      %c0_15 = arith.constant 0 : index
      %c0_16 = arith.constant 0 : index
      %27 = vector.load %arg6[%c0_15, %c0_16] : memref<256x128xbf16, #tpu.memory_space<vmem>>, vector<256x128xbf16>
      tpu.vector_store %arg6[%c0_15, %c0_16], %26 {strides = array<i32>} : memref<256x128xbf16, #tpu.memory_space<vmem>>, vector<256x128xbf16>,
    } else {
    }
    return
  }
  func.func @transform_0(%arg0: i32, %arg1: i32, %arg2: i32) -> (i32, i32) {
    %c0_i32 = arith.constant 0 : i32
    return %arg0, %arg2 : i32, i32
  }
  func.func @transform_1(%arg0: i32, %arg1: i32, %arg2: i32) -> (i32, i32) {
    %c0_i32 = arith.constant 0 : i32
    return %arg2, %arg1 : i32, i32
  }
  func.func @transform_2(%arg0: i32, %arg1: i32, %arg2: i32) -> (i32, i32) {
    %c0_i32 = arith.constant 0 : i32
    %c0_i32_0 = arith.constant 0 : i32
    return %c0_i32, %arg1 : i32, i32
  }
  func.func @transform_3(%arg0: i32, %arg1: i32, %arg2: i32) -> (i32, i32) {
    %c0_i32 = arith.constant 0 : i32
    return %arg0, %arg1 : i32, i32
  }
}

module attributes {stable_mosaic.version = 11 : i64} {
  func.func @_fused_conv_epilogue_kernel(%arg0: i32, %arg1: i32, %arg2: i32, %arg3: memref<256x128xbf16, #tpu.memory_space<vmem>>, %arg4: memref<128x128xbf16, #tpu.memory_space<vmem>>, %arg5: memref<2x128xf32, #tpu.memory_space<vmem>>, %arg6: memref<256x128xbf16, #tpu.memory_space<vmem>>, %arg7: memref<256x128xf32, #tpu.memory_space<vmem>>) attributes {dimension_semantics = [#tpu.dimension_semantics<parallel>, #tpu.dimension_semantics<parallel>, #tpu.dimension_semantics<arbitrary>], iteration_bounds = array<i64: 2, 1, 1>, scalar_prefetch = 0 : i64, scratch_operands = 0 : i64, tpu.core_type = #tpu.core_type<tc>, window_params = [{transform_indices = @transform_0, window_bounds = array<i64: 256, 128>}, {transform_indices = @transform_1, window_bounds = array<i64: 128, 128>}, {transform_indices = @transform_2, window_bounds = array<i64: 2, 128>}, {transform_indices = @transform_3, window_bounds = array<i64: 256, 128>}, {transform_indices = @transform_4, window_bounds = array<i64: 256, 128>}]} {
    %c0_i32 = arith.constant 0 : i32
    %0 = arith.cmpi eq, %arg2, %c0_i32 : i32
    %1 = arith.extui %0 : i1 to i32
    %c0_i32_0 = arith.constant 0 : i32
    %2 = arith.cmpi ne, %1, %c0_i32_0 : i32
    scf.if %2 {
      %cst_10 = arith.constant 0.000000e+00 : f32
      %12 = vector.broadcast %cst_10 : f32 to vector<256x128xf32>
      %c0_11 = arith.constant 0 : index
      %c0_12 = arith.constant 0 : index
      %13 = vector.load %arg7[%c0_11, %c0_12] : memref<256x128xf32, #tpu.memory_space<vmem>>, vector<256x128xf32>
      tpu.vector_store %arg7[%c0_11, %c0_12], %12 {strides = array<i32>} : memref<256x128xf32, #tpu.memory_space<vmem>>, vector<256x128xf32>,
    } else {
    }
    %c0 = arith.constant 0 : index
    %c0_1 = arith.constant 0 : index
    %3 = vector.load %arg7[%c0, %c0_1] : memref<256x128xf32, #tpu.memory_space<vmem>>, vector<256x128xf32>
    %c0_2 = arith.constant 0 : index
    %c0_3 = arith.constant 0 : index
    %4 = vector.load %arg3[%c0_2, %c0_3] : memref<256x128xbf16, #tpu.memory_space<vmem>>, vector<256x128xbf16>
    %c0_4 = arith.constant 0 : index
    %c0_5 = arith.constant 0 : index
    %5 = vector.load %arg4[%c0_4, %c0_5] : memref<128x128xbf16, #tpu.memory_space<vmem>>, vector<128x128xbf16>
    %cst = arith.constant dense<0.000000e+00> : vector<256x128xf32>
    %6 = tpu.matmul %4, %5, %cst {dimension_numbers = #tpu.dot_dimension_numbers<[1], [0], [0], [1], [0, 0, 1, 1], [], []>} : vector<256x128xbf16>, vector<128x128xbf16>, vector<256x128xf32> -> vector<256x128xf32>
    %7 = arith.addf %3, %6 : vector<256x128xf32>
    %c0_6 = arith.constant 0 : index
    %c0_7 = arith.constant 0 : index
    %8 = vector.load %arg7[%c0_6, %c0_7] : memref<256x128xf32, #tpu.memory_space<vmem>>, vector<256x128xf32>
    tpu.vector_store %arg7[%c0_6, %c0_7], %7 {strides = array<i32>} : memref<256x128xf32, #tpu.memory_space<vmem>>, vector<256x128xf32>,
    %c0_i32_8 = arith.constant 0 : i32
    %9 = arith.cmpi eq, %arg2, %c0_i32_8 : i32
    %10 = arith.extui %9 : i1 to i32
    %c0_i32_9 = arith.constant 0 : i32
    %11 = arith.cmpi ne, %10, %c0_i32_9 : i32
    scf.if %11 {
      %c0_10 = arith.constant 0 : index
      %c0_11 = arith.constant 0 : index
      %12 = vector.load %arg5[%c0_10, %c0_11] : memref<2x128xf32, #tpu.memory_space<vmem>>, vector<2x128xf32>
      %c0_12 = arith.constant 0 : index
      %c0_13 = arith.constant 0 : index
      %13 = vector.load %arg7[%c0_12, %c0_13] : memref<256x128xf32, #tpu.memory_space<vmem>>, vector<256x128xf32>
      %14 = vector.extract_strided_slice %12 {offsets = [0, 0], sizes = [1, 128], strides = [1, 1]} : vector<2x128xf32> to vector<1x128xf32>
      %15 = vector.broadcast %14 : vector<1x128xf32> to vector<256x128xf32>
      %16 = arith.mulf %13, %15 : vector<256x128xf32>
      %17 = vector.extract_strided_slice %12 {offsets = [1, 0], sizes = [1, 128], strides = [1, 1]} : vector<2x128xf32> to vector<1x128xf32>
      %18 = vector.broadcast %17 : vector<1x128xf32> to vector<256x128xf32>
      %19 = arith.addf %16, %18 : vector<256x128xf32>
      %20 = arith.negf %19 : vector<256x128xf32>
      %21 = math.exp %20 : vector<256x128xf32>
      %cst_14 = arith.constant 1.000000e+00 : f32
      %22 = vector.broadcast %cst_14 : f32 to vector<256x128xf32>
      %23 = arith.addf %22, %21 : vector<256x128xf32>
      %24 = arith.divf %22, %23 : vector<256x128xf32>
      %25 = arith.mulf %19, %24 : vector<256x128xf32>
      %c0_15 = arith.constant 0 : index
      %c0_16 = arith.constant 0 : index
      %26 = vector.load %arg6[%c0_15, %c0_16] : memref<256x128xbf16, #tpu.memory_space<vmem>>, vector<256x128xbf16>
      %27 = arith.extf %26 : vector<256x128xbf16> to vector<256x128xf32>
      %28 = arith.addf %25, %27 : vector<256x128xf32>
      %c0_17 = arith.constant 0 : index
      %c0_18 = arith.constant 0 : index
      %29 = vector.load %arg7[%c0_17, %c0_18] : memref<256x128xf32, #tpu.memory_space<vmem>>, vector<256x128xf32>
      tpu.vector_store %arg7[%c0_17, %c0_18], %28 {strides = array<i32>} : memref<256x128xf32, #tpu.memory_space<vmem>>, vector<256x128xf32>,
    } else {
    }
    return
  }
  func.func @transform_0(%arg0: i32, %arg1: i32, %arg2: i32) -> (i32, i32) {
    %c0_i32 = arith.constant 0 : i32
    return %arg0, %arg2 : i32, i32
  }
  func.func @transform_1(%arg0: i32, %arg1: i32, %arg2: i32) -> (i32, i32) {
    %c0_i32 = arith.constant 0 : i32
    return %arg2, %arg1 : i32, i32
  }
  func.func @transform_2(%arg0: i32, %arg1: i32, %arg2: i32) -> (i32, i32) {
    %c0_i32 = arith.constant 0 : i32
    %c0_i32_0 = arith.constant 0 : i32
    return %c0_i32, %arg1 : i32, i32
  }
  func.func @transform_3(%arg0: i32, %arg1: i32, %arg2: i32) -> (i32, i32) {
    %c0_i32 = arith.constant 0 : i32
    return %arg0, %arg1 : i32, i32
  }
  func.func @transform_4(%arg0: i32, %arg1: i32, %arg2: i32) -> (i32, i32) {
    %c0_i32 = arith.constant 0 : i32
    return %arg0, %arg1 : i32, i32
  }
}

</mosaic_0001>

<bundles_post_ra>
// kernel: bottleneck_forward.2
= control target key start
LH: loop header
LB: loop body
LE: loop exit
PB: predicated region body
PF: predicated region fallthrough
CT: control target
= control target key end

     0   :  { %s1890_s12 = smov 0   ;;  %s1892_s13 = smov 0   ;;  %s2189_s0 = inlined_call_operand.vmem [shape: bf16[512,128], index: 0, kind: input, shape index: {}]   ;;  %s2190_s1 = inlined_call_operand.vmem [shape: bf16[128,128], index: 1, kind: input, shape index: {}]   ;;  %s2191_s2 = inlined_call_operand.vmem [shape: f32[2,128], index: 2, kind: input, shape index: {}]   ;;  %s2192_s3 = inlined_call_operand.vmem [shape: bf16[512,128], index: 3, kind: output, shape index: {}]  }
   0x1   :  { %s1894_s14 = smov 0  }
   0x2 LB: > { %s32_s15 = sadd.s32 1, %s1864_s13  ;;  %p1360_p0 = scmp.ge.s32.totalorder %s1868_s14, 1  ;;  %s1868_s14 = sphi %s1894_s14, %s13_s14   ;;  %s1864_s13 = sphi %s1892_s13, %s2194_s13   ;;  %s1860_s12 = sphi %s1890_s12, %s2193_s12  }
   0x3   : > { %p34_p1 = scmp.ge.s32.totalorder %s32_s15, 2  ;;  %p189_p2 = scmp.lt.s32.totalorder %s1868_s14, 3 }
   0x5   : > { %s2196_s15 = smov (%p34_p1, %s32_s15), 0  ;;  %p190_p3 = pnand %p1360_p0, %p189_p2 }
   0x6   : > { %s1361_s18 = sshll.u32 (!%p190_p3), %s1860_s12, 5 }
   0x7   : > { %193 = sbr.rel (%p190_p3) target bundleno = 331 (0x14b), region = 32  ;;  %p232_p4 = scmp.lt.s32.totalorder (!%p190_p3), %s1361_s18, 63 }
   0xc   : > { %v1694_v0 = vld [vmem:[%s2190_s1 + $0x38] sm:$0xff]   ;;  %v1695_v1 = vld [vmem:[%s2190_s1 + $0x30] sm:$0xff]   ;;  %s2198_s18 = smov (!%p232_p4, %s1361_s18), 63  ;;  %v1696_v2 = vld [vmem:[%s2190_s1 + $0x28] sm:$0xff]   ;;  %v784_v24 = vlaneseq }
   0xd   : > { %1606 = vmatprep.subr.bf16.mxu0 %v1694_v0  ;;  %1654 = vmatprep.subr.bf16.mxu1 %v1694_v0  ;;  %s1362_s23 = sshll.u32 %s2198_s18, 2  ;;  %v1697_v3 = vld [vmem:[%s2190_s1 + $0x20] sm:$0xff]   ;;  %v1698_v6 = vld [vmem:[%s2190_s1 + $0x18] sm:$0xff]   ;;  %v1699_v7 = vld [vmem:[%s2190_s1 + $0x10] sm:$0xff]  }
   0xe   : > { %1607 = vmatpush3.bf16.msra.mxu0 %v1694_v0  ;;  %1662 = vmatpush3.bf16.msra.mxu1 %v1694_v0  ;;  %s1925_s26 = scalar_lea.vmem %s2189_s0, %s1362_s23  ;;  %v1700_v8 = vld [vmem:[%s2190_s1 + $0x8] sm:$0xff]   ;;  %v1701_v9 = vld [vmem:[%s2190_s1] sm:$0xff]   ;;  %v785_v25 = vshrl.u32 %v784_v24, 7  ;;  %s2117_s17 = scalar_lea.vmem %s2192_s3, %s1362_s23 }
   0xf   : > { %1608 = vmatprep.subr.bf16.mxu0 %v1695_v1  ;;  %1655 = vmatprep.subr.bf16.mxu1 %v1695_v1  ;;  %v1702_v4 = vld [vmem:[%s1925_s26] sm:$0xff]   ;;  %v1704_v10 = vld [vmem:[%s1925_s26 + $0x8] sm:$0xff]   ;;  %v1706_v12 = vld [vmem:[%s1925_s26 + $0x10] sm:$0xff]  }
  0x10   : > { %v1703_v5 = vld [vmem:[%s1925_s26 + $0x40] sm:$0xff]   ;;  %1622 = vmatprep.mubr.bf16.mxu0 %v1702_v4  ;;  %v1705_v11 = vld [vmem:[%s1925_s26 + $0x48] sm:$0xff]   ;;  %v1707_v13 = vld [vmem:[%s1925_s26 + $0x50] sm:$0xff]   ;;  %v786_v26 = vsub.s32 0, %v785_v25  ;;  %v822_v28 = vsub.s32 1, %v785_v25 }
  0x11   : > { %1638 = vmatprep.mubr.bf16.mxu1 %v1703_v5  ;;  %v1708_v14 = vld [vmem:[%s1925_s26 + $0x18] sm:$0xff]   ;;  %v1710_v16 = vld [vmem:[%s1925_s26 + $0x20] sm:$0xff]   ;;  %v1712_v18 = vld [vmem:[%s1925_s26 + $0x28] sm:$0xff]  }
  0x12   : > { %1609 = vmatpush3.bf16.msra.mxu0 %v1695_v1  ;;  %1663 = vmatpush3.bf16.msra.mxu1 %v1695_v1  ;;  %v1709_v15 = vld [vmem:[%s1925_s26 + $0x58] sm:$0xff]   ;;  %v1711_v17 = vld [vmem:[%s1925_s26 + $0x60] sm:$0xff]   ;;  %v1713_v19 = vld [vmem:[%s1925_s26 + $0x68] sm:$0xff]  }
  0x13   : > { %1610 = vmatprep.subr.bf16.mxu0 %v1696_v2  ;;  %1656 = vmatprep.subr.bf16.mxu1 %v1696_v2  ;;  %v1714_v20 = vld [vmem:[%s1925_s26 + $0x30] sm:$0xff]   ;;  %v1716_v22 = vld [vmem:[%s1925_s26 + $0x38] sm:$0xff]   ;;  %v751_v27 = vld [vmem:[%s2191_s2] sm:$0x3] }
  0x14   : > { %v1715_v21 = vld [vmem:[%s1925_s26 + $0x70] sm:$0xff]   ;;  %v1717_v23 = vld [vmem:[%s1925_s26 + $0x78] sm:$0xff]   ;;  %v1961_v29 = vrot.slane %v751_v27, %v786_v26  ;;  %v1963_v30 = vrot.slane %v751_v27, %v822_v28 }
  0x16   : > { %1611 = vmatpush3.bf16.msra.mxu0 %v1696_v2  ;;  %1664 = vmatpush3.bf16.msra.mxu1 %v1696_v2 }
  0x17   : > { %1612 = vmatprep.subr.bf16.mxu0 %v1697_v3  ;;  %1657 = vmatprep.subr.bf16.mxu1 %v1697_v3 }
  0x1a   : > { %1613 = vmatpush3.bf16.msra.mxu0 %v1697_v3  ;;  %1665 = vmatpush3.bf16.msra.mxu1 %v1697_v3 }
  0x1b   : > { %1614 = vmatprep.subr.bf16.mxu0 %v1698_v6  ;;  %1658 = vmatprep.subr.bf16.mxu1 %v1698_v6 }
  0x1e   : > { %1615 = vmatpush3.bf16.msra.mxu0 %v1698_v6  ;;  %1666 = vmatpush3.bf16.msra.mxu1 %v1698_v6 }
  0x1f   : > { %1616 = vmatprep.subr.bf16.mxu0 %v1699_v7  ;;  %1659 = vmatprep.subr.bf16.mxu1 %v1699_v7 }
  0x22   : > { %1617 = vmatpush3.bf16.msra.mxu0 %v1699_v7  ;;  %1667 = vmatpush3.bf16.msra.mxu1 %v1699_v7 }
  0x23   : > { %1618 = vmatprep.subr.bf16.mxu0 %v1700_v8  ;;  %1660 = vmatprep.subr.bf16.mxu1 %v1700_v8 }
  0x26   : > { %1619 = vmatpush3.bf16.msra.mxu0 %v1700_v8  ;;  %1668 = vmatpush3.bf16.msra.mxu1 %v1700_v8 }
  0x27   : > { %1620 = vmatprep.subr.bf16.mxu0 %v1701_v9  ;;  %1661 = vmatprep.subr.bf16.mxu1 %v1701_v9 }
  0x2a   : > { %1621 = vmatpush3.bf16.msra.mxu0 %v1701_v9  ;;  %1669 = vmatpush3.bf16.msra.mxu1 %v1701_v9 }
  0x2d   : > { %1623 = vmatmul.mubr.bf16.vlgmr.msra.gmra.mxu0 %v1704_v10  ;;  %1639 = vmatmul.mubr.bf16.vlgmr.msra.gmra.mxu1 %v1705_v11 }
  0x2e   : > { %1626 = vmatprep.mubr.bf16.mxu0 %v1706_v12  ;;  %1642 = vmatprep.mubr.bf16.mxu1 %v1707_v13 }
  0x35   : > { %1627 = vmatmul.mubr.bf16.gmra.mxu0 %v1708_v14  ;;  %1643 = vmatmul.mubr.bf16.gmra.mxu1 %v1709_v15 }
  0x36   : > { %1630 = vmatprep.mubr.bf16.mxu0 %v1710_v16  ;;  %1646 = vmatprep.mubr.bf16.mxu1 %v1711_v17 }
  0x3d   : > { %1631 = vmatmul.mubr.bf16.gmra.mxu0 %v1712_v18  ;;  %1647 = vmatmul.mubr.bf16.gmra.mxu1 %v1713_v19 }
  0x3e   : > { %1634 = vmatprep.mubr.bf16.mxu0 %v1714_v20  ;;  %1650 = vmatprep.mubr.bf16.mxu1 %v1715_v21 }
  0x45   : > { %1635 = vmatmul.mubr.bf16.gmra.mxu0 %v1716_v22  ;;  %1651 = vmatmul.mubr.bf16.gmra.mxu1 %v1717_v23 }
  0xed   : > { %v1624_v31 = vpop.f32.mrf.mxu0  ;;  %v1640_v32 = vpop.f32.mrf.mxu1 }
  0xee   : > { %v790_v33 = vmul.f32 %v1624_v31, %v1961_v29  ;;  %v806_v34 = vmul.f32 %v1640_v32, %v1961_v29 }
  0xef   : > { %v557_v35 = vpop.f32.mrf.mxu0  ;;  %v621_v36 = vpop.f32.mrf.mxu1 }
  0xf0   : > { %v1968_v37 = vadd.f32 %v1963_v30, %v790_v33  ;;  %v1971_v38 = vadd.f32 %v1963_v30, %v806_v34  ;;  %v788_v39 = vmul.f32 %v1961_v29, %v557_v35  ;;  %v804_v40 = vmul.f32 %v1961_v29, %v621_v36 }
  0xf1   : > { %v1625_v41 = vpop.f32.mrf.mxu0  ;;  %v1641_v42 = vpop.f32.mrf.mxu1 }
  0xf2   : > { %v1391_v43 = vmul.f32 -1.442695, %v1968_v37  ;;  %v1407_v44 = vmul.f32 -1.442695, %v1971_v38  ;;  %v1978_v45 = vadd.f32 %v1963_v30, %v788_v39  ;;  %v1981_v46 = vadd.f32 %v1963_v30, %v804_v40 }
  0xf3   : > { %v791_v47 = vmul.f32 %v1625_v41, %v1961_v29  ;;  %v807_v48 = vmul.f32 %v1641_v42, %v1961_v29  ;;  %v560_v49 = vpop.f32.mrf.mxu0  ;;  %v624_v50 = vpop.f32.mrf.mxu1 }
  0xf4   : > { %1718 = vpow2.f32 %v1391_v43  ;;  %v1389_v51 = vmul.f32 -1.442695, %v1978_v45  ;;  %v1405_v52 = vmul.f32 -1.442695, %v1981_v46  ;;  %v789_v53 = vmul.f32 %v1961_v29, %v560_v49 }
  0xf5   : > { %1720 = vpow2.f32 %v1407_v44  ;;  %v1989_v54 = vadd.f32 %v1963_v30, %v791_v47  ;;  %v1992_v55 = vadd.f32 %v1963_v30, %v807_v48  ;;  %v805_v56 = vmul.f32 %v1961_v29, %v624_v50  ;;  %v1628_v57 = vpop.f32.mrf.mxu0  ;;  %v1644_v58 = vpop.f32.mrf.mxu1 }
  0xf6   : > { %1722 = vpow2.f32 %v1389_v51  ;;  %v1996_v59 = vadd.f32 %v1963_v30, %v789_v53  ;;  %v794_v60 = vmul.f32 %v1628_v57, %v1961_v29  ;;  %v810_v61 = vmul.f32 %v1644_v58, %v1961_v29 }
  0xf7   : > { %1724 = vpow2.f32 %v1405_v52  ;;  %v1392_v62 = vmul.f32 -1.442695, %v1989_v54  ;;  %v1408_v63 = vmul.f32 -1.442695, %v1992_v55  ;;  %v2003_v0 = vadd.f32 %v1963_v30, %v805_v56  ;;  %v573_v1 = vpop.f32.mrf.mxu0  ;;  %v637_v2 = vpop.f32.mrf.mxu1 }
  0xf8   : > { %v1390_v3 = vmul.f32 -1.442695, %v1996_v59  ;;  %v2007_v4 = vadd.f32 %v1963_v30, %v794_v60  ;;  %v2010_v5 = vadd.f32 %v1963_v30, %v810_v61  ;;  %v792_v6 = vmul.f32 %v1961_v29, %v573_v1 }
  0xf9   : > { %1726 = vpow2.f32 %v1392_v62  ;;  %v1406_v7 = vmul.f32 -1.442695, %v2003_v0  ;;  %v808_v8 = vmul.f32 %v1961_v29, %v637_v2  ;;  %v1629_v9 = vpop.f32.mrf.mxu0  ;;  %v1645_v10 = vpop.f32.mrf.mxu1 }
  0xfa   : > { %1728 = vpow2.f32 %v1408_v63  ;;  %v1395_v11 = vmul.f32 -1.442695, %v2007_v4  ;;  %v1411_v12 = vmul.f32 -1.442695, %v2010_v5  ;;  %v2018_v13 = vadd.f32 %v1963_v30, %v792_v6 }
  0xfb   : > { %1730 = vpow2.f32 %v1390_v3  ;;  %v2021_v14 = vadd.f32 %v1963_v30, %v808_v8  ;;  %v795_v15 = vmul.f32 %v1629_v9, %v1961_v29  ;;  %v811_v16 = vmul.f32 %v1645_v10, %v1961_v29  ;;  %v576_v17 = vpop.f32.mrf.mxu0  ;;  %v640_v18 = vpop.f32.mrf.mxu1 }
  0xfc   : > { %1732 = vpow2.f32 %v1406_v7  ;;  %v1393_v19 = vmul.f32 -1.442695, %v2018_v13  ;;  %v793_v20 = vmul.f32 %v1961_v29, %v576_v17  ;;  %v809_v21 = vmul.f32 %v1961_v29, %v640_v18 }
  0xfd   : > { %1734 = vpow2.f32 %v1395_v11  ;;  %v1409_v22 = vmul.f32 -1.442695, %v2021_v14  ;;  %v2030_v23 = vadd.f32 %v1963_v30, %v795_v15  ;;  %v2033_v24 = vadd.f32 %v1963_v30, %v811_v16  ;;  %v1632_v25 = vpop.f32.mrf.mxu0  ;;  %v1648_v26 = vpop.f32.mrf.mxu1 }
  0xfe   : > { %1736 = vpow2.f32 %v1411_v12  ;;  %v2036_v27 = vadd.f32 %v1963_v30, %v793_v20  ;;  %v2042_v35 = vadd.f32 %v1963_v30, %v809_v21  ;;  %v798_v39 = vmul.f32 %v1632_v25, %v1961_v29 }
  0xff   : > { %1738 = vpow2.f32 %v1393_v19  ;;  %v1396_v28 = vmul.f32 -1.442695, %v2030_v23  ;;  %v1412_v31 = vmul.f32 -1.442695, %v2033_v24  ;;  %v589_v32 = vpop.f32.mrf.mxu0  ;;  %v653_v33 = vpop.f32.mrf.mxu1  ;;  %v814_v44 = vmul.f32 %v1648_v26, %v1961_v29 }
 0x100   : > { %1740 = vpow2.f32 %v1409_v22  ;;  %v1394_v34 = vmul.f32 -1.442695, %v2036_v27  ;;  %v1410_v52 = vmul.f32 -1.442695, %v2042_v35  ;;  %v2048_v56 = vadd.f32 %v1963_v30, %v798_v39 }
 0x101   : > { %v1719_v36 = vpop.eup %1718  ;;  %1742 = vpow2.f32 %v1396_v28  ;;  %v1633_v40 = vpop.f32.mrf.mxu0  ;;  %v2051_v60 = vadd.f32 %v1963_v30, %v814_v44  ;;  %v796_v3 = vmul.f32 %v1961_v29, %v589_v32  ;;  %v812_v9 = vmul.f32 %v1961_v29, %v653_v33 }
 0x102   : > { %v1649_v41 = vpop.f32.mrf.mxu1  ;;  %v1721_v42 = vpop.eup %1720  ;;  %v954_v43 = vadd.f32 1.0, %v1719_v36  ;;  %1744 = vpow2.f32 %v1412_v31  ;;  %v1399_v8 = vmul.f32 -1.442695, %v2048_v56  ;;  %v799_v16 = vmul.f32 %v1633_v40, %v1961_v29 }
 0x103   : > { %v1723_v47 = vpop.eup %1722  ;;  %v970_v48 = vadd.f32 1.0, %v1721_v42  ;;  %1746 = vpow2.f32 %v1394_v34  ;;  %v592_v49 = vpop.f32.mrf.mxu0  ;;  %v1415_v15 = vmul.f32 -1.442695, %v2051_v60  ;;  %v815_v19 = vmul.f32 %v1649_v41, %v1961_v29 }
 0x104   : > { %v1725_v50 = vpop.eup %1724  ;;  %1748 = vrcp.f32 %v954_v43  ;;  %v952_v51 = vadd.f32 1.0, %v1723_v47  ;;  %v656_v57 = vpop.f32.mrf.mxu1  ;;  %v797_v20 = vmul.f32 %v1961_v29, %v592_v49  ;;  %v2063_v33 = vadd.f32 %v1963_v30, %v796_v3 }
 0x105   : > { %1750 = vrcp.f32 %v970_v48  ;;  %v968_v53 = vadd.f32 1.0, %v1725_v50  ;;  %v1636_v63 = vpop.f32.mrf.mxu0  ;;  %v813_v26 = vmul.f32 %v1961_v29, %v656_v57  ;;  %v2067_v41 = vadd.f32 %v1963_v30, %v812_v9 }
 0x106   : > { %v1727_v58 = vpop.eup %1726  ;;  %1752 = vrcp.f32 %v952_v51  ;;  %v1652_v10 = vpop.f32.mrf.mxu1  ;;  %v802_v28 = vmul.f32 %v1636_v63, %v1961_v29  ;;  %v2070_v42 = vadd.f32 %v1963_v30, %v799_v16  ;;  %v2073_v47 = vadd.f32 %v1963_v30, %v815_v19 }
 0x107   : > { %v1729_v61 = vpop.eup %1728  ;;  %1754 = vrcp.f32 %v968_v53  ;;  %v955_v62 = vadd.f32 1.0, %v1727_v58  ;;  %v605_v21 = vpop.f32.mrf.mxu0  ;;  %v818_v34 = vmul.f32 %v1652_v10, %v1961_v29  ;;  %v2076_v48 = vadd.f32 %v1963_v30, %v797_v20 }
 0x108   : > { %v1731_v1 = vpop.eup %1730  ;;  %v971_v2 = vadd.f32 1.0, %v1729_v61  ;;  %1756 = vpow2.f32 %v1410_v52  ;;  %v669_v36 = vpop.f32.mrf.mxu1  ;;  %v2079_v52 = vadd.f32 %v1963_v30, %v813_v26  ;;  %v2082_v53 = vadd.f32 %v1963_v30, %v802_v28 }
 0x109   : > { %v1733_v6 = vpop.eup %1732  ;;  %1758 = vrcp.f32 %v955_v62  ;;  %v953_v7 = vadd.f32 1.0, %v1731_v1  ;;  %v1637_v49 = vpop.f32.mrf.mxu0  ;;  %v2085_v61 = vadd.f32 %v1963_v30, %v818_v34  ;;  %v800_v62 = vmul.f32 %v1961_v29, %v605_v21 }
 0x10a   : > { %v1735_v11 = vpop.eup %1734  ;;  %1760 = vrcp.f32 %v971_v2  ;;  %v969_v12 = vadd.f32 1.0, %v1733_v6  ;;  %v1653_v63 = vpop.f32.mrf.mxu1  ;;  %v1397_v2 = vmul.f32 -1.442695, %v2063_v33  ;;  %v816_v3 = vmul.f32 %v1961_v29, %v669_v36 }
 0x10b   : > { %v1737_v17 = vpop.eup %1736  ;;  %1762 = vrcp.f32 %v953_v7  ;;  %v958_v18 = vadd.f32 1.0, %v1735_v11  ;;  %v803_v6 = vmul.f32 %v1637_v49, %v1961_v29  ;;  %v1413_v9 = vmul.f32 -1.442695, %v2067_v41  ;;  %v608_v19 = vpop.f32.mrf.mxu0 }
 0x10c   : > { %v1739_v22 = vpop.eup %1738  ;;  %1764 = vrcp.f32 %v969_v12  ;;  %v974_v25 = vadd.f32 1.0, %v1737_v17  ;;  %v1400_v10 = vmul.f32 -1.442695, %v2070_v42  ;;  %v1416_v11 = vmul.f32 -1.442695, %v2073_v47 }
 0x10d   : > { %v1741_v31 = vpop.eup %1740  ;;  %1766 = vrcp.f32 %v958_v18  ;;  %v956_v32 = vadd.f32 1.0, %v1739_v22  ;;  %v1398_v16 = vmul.f32 -1.442695, %v2076_v48  ;;  %v1414_v17 = vmul.f32 -1.442695, %v2079_v52 }
 0x10e   : > { %v1743_v39 = vpop.eup %1742  ;;  %1768 = vrcp.f32 %v974_v25  ;;  %v972_v40 = vadd.f32 1.0, %v1741_v31  ;;  %v819_v18 = vmul.f32 %v1653_v63, %v1961_v29  ;;  %v1403_v21 = vmul.f32 -1.442695, %v2082_v53 }
 0x10f   : > { %v1745_v43 = vpop.eup %1744  ;;  %1770 = vrcp.f32 %v956_v32  ;;  %v959_v44 = vadd.f32 1.0, %v1743_v39  ;;  %v1419_v22 = vmul.f32 -1.442695, %v2085_v61  ;;  %v2100_v25 = vadd.f32 %v1963_v30, %v800_v62 }
 0x110   : > { %v1747_v50 = vpop.eup %1746  ;;  %1772 = vrcp.f32 %v972_v40  ;;  %v975_v51 = vadd.f32 1.0, %v1745_v43  ;;  %v2106_v31 = vadd.f32 %v1963_v30, %v803_v6  ;;  %v801_v36 = vmul.f32 %v1961_v29, %v608_v19 }
 0x111   : > { %v1749_v57 = vpop.eup %1748  ;;  %1774 = vrcp.f32 %v959_v44  ;;  %v957_v58 = vadd.f32 1.0, %v1747_v50  ;;  %v672_v50 = vpop.f32.mrf.mxu1 }
 0x112   : > { %v1751_v1 = vpop.eup %1750  ;;  %1776 = vrcp.f32 %v975_v51  ;;  %v1404_v6 = vmul.f32 -1.442695, %v2106_v31 }
 0x113   : > { %v1753_v7 = vpop.eup %1752  ;;  %1778 = vrcp.f32 %v957_v58  ;;  %v1066_v40 = vmul.f32 %v1751_v1, %v1971_v38  ;;  %v2130_v1 = vadd.f32 %v1963_v30, %v801_v36 }
 0x114   : > { %v1755_v12 = vpop.eup %1754  ;;  %1780 = vpow2.f32 %v1399_v8  ;;  %v2103_v8 = vadd.f32 %v1963_v30, %v816_v3  ;;  %v1048_v44 = vmul.f32 %v1753_v7, %v1978_v45  ;;  %v1401_v45 = vmul.f32 -1.442695, %v2100_v25 }
 0x115   : > { %v1757_v20 = vpop.eup %1756  ;;  %1782 = vpow2.f32 %v1415_v15  ;;  %v1050_v15 = vmul.f32 %v1749_v57, %v1968_v37  ;;  %v2121_v37 = vadd.f32 %v1963_v30, %v819_v18  ;;  %v1064_v57 = vmul.f32 %v1755_v12, %v1981_v46 }
 0x116   : > { %v1759_v26 = vpop.eup %1758  ;;  %v973_v28 = vadd.f32 1.0, %v1757_v20  ;;  %1784 = vpow2.f32 %v1397_v2  ;;  %v1417_v46 = vmul.f32 -1.442695, %v2103_v8  ;;  %v817_v3 = vmul.f32 %v1961_v29, %v672_v50 }
 0x117   : > { %v1761_v32 = vpop.eup %1760  ;;  %v1051_v34 = vmul.f32 %v1759_v26, %v1989_v54  ;;  %1786 = vpow2.f32 %v1413_v9  ;;  %v1420_v9 = vmul.f32 -1.442695, %v2121_v37 }
 0x118   : > { %v1763_v39 = vpop.eup %1762  ;;  %v1067_v43 = vmul.f32 %v1761_v32, %v1992_v55  ;;  %1788 = vrcp.f32 %v973_v28  ;;  %v2145_v19 = vadd.f32 %v1963_v30, %v817_v3 }
 0x119   : > { %v1765_v54 = vpop.eup %1764  ;;  %v1495_v49 = vpack.c.bf16 %v1051_v34, %v1050_v15  ;;  %v1049_v38 = vmul.f32 %v1763_v39, %v1996_v59  ;;  %1790 = vpow2.f32 %v1400_v10 }
 0x11a   : > { %v1767_v51 = vpop.eup %1766  ;;  %v1535_v58 = vpack.c.bf16 %v1067_v43, %v1066_v40  ;;  %v1065_v55 = vmul.f32 %v1765_v54, %v2003_v0  ;;  %1792 = vpow2.f32 %v1416_v11 }
 0x11b   : > { %v1769_v62 = vpop.eup %1768  ;;  %1567 = vst [vmem:[%s2117_s17 + $0x8] sm:$0xff] %v1495_v49   ;;  %v1490_v63 = vpack.c.bf16 %v1049_v38, %v1048_v44  ;;  %1794 = vpow2.f32 %v1398_v16  ;;  %v1054_v11 = vmul.f32 %v1767_v51, %v2007_v4  ;;  %v1402_v16 = vmul.f32 -1.442695, %v2130_v1 }
 0x11c   : > { %v1771_v59 = vpop.eup %1770  ;;  %1575 = vst [vmem:[%s2117_s17 + $0x48] sm:$0xff] %v1535_v58   ;;  %v1530_v2 = vpack.c.bf16 %v1065_v55, %v1064_v57  ;;  %1796 = vpow2.f32 %v1414_v17  ;;  %v1070_v17 = vmul.f32 %v1769_v62, %v2010_v5 }
 0x11d   : > { %v1773_v0 = vpop.eup %1772  ;;  %1491 = vst [vmem:[%s2117_s17] sm:$0xff] %v1490_v63   ;;  %1798 = vpow2.f32 %v1403_v21  ;;  %v1052_v21 = vmul.f32 %v1771_v59, %v2018_v13  ;;  %v1418_v13 = vmul.f32 -1.442695, %v2145_v19 }
 0x11e   : > { %v1775_v7 = vpop.eup %1774  ;;  %1574 = vst [vmem:[%s2117_s17 + $0x40] sm:$0xff] %v1530_v2   ;;  %1800 = vpow2.f32 %v1419_v22  ;;  %v1068_v39 = vmul.f32 %v1773_v0, %v2021_v14 }
 0x11f   : > { %v1777_v10 = vpop.eup %1776  ;;  %v1055_v12 = vmul.f32 %v1775_v7, %v2030_v23  ;;  %1802 = vpow2.f32 %v1401_v45 }
 0x120   : > { %v1779_v29 = vpop.eup %1778  ;;  %v1071_v18 = vmul.f32 %v1777_v10, %v2033_v24  ;;  %1804 = vpow2.f32 %v1417_v46 }
 0x121   : > { %v1781_v20 = vpop.eup %1780  ;;  %v1505_v4 = vpack.c.bf16 %v1055_v12, %v1054_v11  ;;  %v1053_v23 = vmul.f32 %v1779_v29, %v2036_v27  ;;  %1806 = vpow2.f32 %v1404_v6 }
 0x122   : > { %v1783_v22 = vpop.eup %1782  ;;  %v1545_v26 = vpack.c.bf16 %v1071_v18, %v1070_v17  ;;  %v962_v28 = vadd.f32 1.0, %v1781_v20  ;;  %1808 = vpow2.f32 %v1420_v9 }
 0x123   : > { %v1785_v5 = vpop.eup %1784  ;;  %1569 = vst [vmem:[%s2117_s17 + $0x18] sm:$0xff] %v1505_v4   ;;  %v1500_v24 = vpack.c.bf16 %v1053_v23, %v1052_v21  ;;  %v978_v32 = vadd.f32 1.0, %v1783_v22  ;;  %1810 = vpow2.f32 %v1402_v16 }
 0x124   : > { %v1787_v30 = vpop.eup %1786  ;;  %1577 = vst [vmem:[%s2117_s17 + $0x58] sm:$0xff] %v1545_v26   ;;  %1812 = vrcp.f32 %v962_v28  ;;  %v960_v15 = vadd.f32 1.0, %v1785_v5 }
 0x125   : > { %v1789_v34 = vpop.eup %1788  ;;  %1568 = vst [vmem:[%s2117_s17 + $0x10] sm:$0xff] %v1500_v24   ;;  %1814 = vrcp.f32 %v978_v32  ;;  %v976_v27 = vadd.f32 1.0, %v1787_v30 }
 0x126   : > { %v1791_v36 = vpop.eup %1790  ;;  %v1069_v40 = vmul.f32 %v1789_v34, %v2042_v35  ;;  %1816 = vrcp.f32 %v960_v15 }
 0x127   : > { %v1793_v43 = vpop.eup %1792  ;;  %1818 = vrcp.f32 %v976_v27  ;;  %v963_v54 = vadd.f32 1.0, %v1791_v36 }
 0x128   : > { %v1795_v44 = vpop.eup %1794  ;;  %v1540_v49 = vpack.c.bf16 %v1069_v40, %v1068_v39  ;;  %v979_v38 = vadd.f32 1.0, %v1793_v43  ;;  %1820 = vpow2.f32 %v1418_v13 }
 0x129   : > { %v1797_v50 = vpop.eup %1796  ;;  %1822 = vrcp.f32 %v963_v54  ;;  %v961_v51 = vadd.f32 1.0, %v1795_v44 }
 0x12a   : > { %v1799_v57 = vpop.eup %1798  ;;  %1576 = vst [vmem:[%s2117_s17 + $0x50] sm:$0xff] %v1540_v49   ;;  %1824 = vrcp.f32 %v979_v38  ;;  %v977_v58 = vadd.f32 1.0, %v1797_v50 }
 0x12b   : > { %v1801_v55 = vpop.eup %1800  ;;  %1826 = vrcp.f32 %v961_v51  ;;  %v966_v14 = vadd.f32 1.0, %v1799_v57 }
 0x12c   : > { %v1803_v62 = vpop.eup %1802  ;;  %1828 = vrcp.f32 %v977_v58  ;;  %v982_v35 = vadd.f32 1.0, %v1801_v55 }
 0x12d   : > { %v1805_v63 = vpop.eup %1804  ;;  %v964_v45 = vadd.f32 1.0, %v1803_v62  ;;  %1830 = vrcp.f32 %v966_v14 }
 0x12e   : > { %v1807_v59 = vpop.eup %1806  ;;  %1832 = vrcp.f32 %v982_v35  ;;  %v980_v10 = vadd.f32 1.0, %v1805_v63 }
 0x12f   : > { %v1809_v2 = vpop.eup %1808  ;;  %v967_v46 = vadd.f32 1.0, %v1807_v59  ;;  %1834 = vrcp.f32 %v964_v45 }
 0x130   : > { %v1811_v3 = vpop.eup %1810  ;;  %v983_v0 = vadd.f32 1.0, %v1809_v2 }
 0x131   : > { %v1813_v6 = vpop.eup %1812  ;;  %1836 = vrcp.f32 %v967_v46  ;;  %v965_v7 = vadd.f32 1.0, %v1811_v3 }
 0x132   : > { %v1815_v9 = vpop.eup %1814  ;;  %1838 = vrcp.f32 %v983_v0  ;;  %v1058_v20 = vmul.f32 %v1813_v6, %v2048_v56 }
 0x133   : > { %v1817_v11 = vpop.eup %1816  ;;  %1840 = vrcp.f32 %v965_v7  ;;  %v1074_v23 = vmul.f32 %v1815_v9, %v2051_v60 }
 0x134   : > { %v1819_v12 = vpop.eup %1818  ;;  %1842 = vrcp.f32 %v980_v10  ;;  %v1056_v28 = vmul.f32 %v1817_v11, %v2063_v33 }
 0x135   : > { %v1821_v16 = vpop.eup %1820  ;;  %v1072_v32 = vmul.f32 %v1819_v12, %v2067_v41 }
 0x136   : > { %v1823_v29 = vpop.eup %1822  ;;  %v981_v17 = vadd.f32 1.0, %v1821_v16 }
 0x137   : > { %v1825_v18 = vpop.eup %1824  ;;  %v1059_v21 = vmul.f32 %v1823_v29, %v2070_v42 }
 0x138   : > { %v1827_v4 = vpop.eup %1826  ;;  %v1075_v22 = vmul.f32 %v1825_v18, %v2073_v47  ;;  %1844 = vrcp.f32 %v981_v17 }
 0x139   : > { %v1829_v26 = vpop.eup %1828  ;;  %v1515_v5 = vpack.c.bf16 %v1059_v21, %v1058_v20  ;;  %v1057_v24 = vmul.f32 %v1827_v4, %v2076_v48 }
 0x13a   : > { %v1555_v56 = vpack.c.bf16 %v1075_v22, %v1074_v23  ;;  %v1073_v42 = vmul.f32 %v1829_v26, %v2079_v52  ;;  %v1831_v30 = vpop.eup %1830 }
 0x13b   : > { %1571 = vst [vmem:[%s2117_s17 + $0x28] sm:$0xff] %v1515_v5   ;;  %v1510_v15 = vpack.c.bf16 %v1057_v24, %v1056_v28  ;;  %v1833_v60 = vpop.eup %1832  ;;  %v1062_v48 = vmul.f32 %v1831_v30, %v2082_v53 }
 0x13c   : > { %1579 = vst [vmem:[%s2117_s17 + $0x68] sm:$0xff] %v1555_v56   ;;  %v1550_v47 = vpack.c.bf16 %v1073_v42, %v1072_v32  ;;  %v1835_v13 = vpop.eup %1834  ;;  %v1078_v52 = vmul.f32 %v1833_v60, %v2085_v61 }
 0x13d   : > { %1570 = vst [vmem:[%s2117_s17 + $0x20] sm:$0xff] %v1510_v15   ;;  %v1060_v39 = vmul.f32 %v1835_v13, %v2100_v25 }
 0x13e   : > { %v1837_v34 = vpop.eup %1836  ;;  %1578 = vst [vmem:[%s2117_s17 + $0x60] sm:$0xff] %v1550_v47  }
 0x13f   : > { %v1839_v33 = vpop.eup %1838  ;;  %v1063_v41 = vmul.f32 %v1837_v34, %v2106_v31 }
 0x140   : > { %v1841_v27 = vpop.eup %1840  ;;  %v1079_v36 = vmul.f32 %v1839_v33, %v2121_v37 }
 0x141   : > { %v1525_v40 = vpack.c.bf16 %v1063_v41, %v1062_v48  ;;  %v1061_v43 = vmul.f32 %v1841_v27, %v2130_v1  ;;  %v1843_v44 = vpop.eup %1842 }
 0x142   : > { %v1565_v54 = vpack.c.bf16 %v1079_v36, %v1078_v52  ;;  %v1076_v53 = vmul.f32 %v1843_v44, %v2103_v8 }
 0x143   : > { %1573 = vst [vmem:[%s2117_s17 + $0x38] sm:$0xff] %v1525_v40   ;;  %v1520_v49 = vpack.c.bf16 %v1061_v43, %v1060_v39 }
 0x144   : > { %1581 = vst [vmem:[%s2117_s17 + $0x78] sm:$0xff] %v1565_v54  }
 0x145   : > { %v1845_v38 = vpop.eup %1844  ;;  %1572 = vst [vmem:[%s2117_s17 + $0x30] sm:$0xff] %v1520_v49  }
 0x146   : > { %v1077_v31 = vmul.f32 %v1845_v38, %v2145_v19 }
 0x148   : > { %v1560_v50 = vpack.c.bf16 %v1077_v31, %v1076_v53 }
 0x14a   : > { %1580 = vst [vmem:[%s2117_s17 + $0x70] sm:$0xff] %v1560_v50  }
 0x14b PF: > { %s13_s14 = sadd.s32 1, %s1868_s14   ;;  %s2193_s12 = smov %s1864_s13 }
 0x14c   : > { %p10_p5 = scmp.ge.s32.totalorder %s13_s14, 4   ;;  %s2194_s13 = smov %s2196_s15 }
 0x14e   :  { %12 = sbr.rel (!%p10_p5) target bundleno = 2 (0x2), region = 76 }

// kernel: bottleneck_forward.3
= control target key start
LH: loop header
LB: loop body
LE: loop exit
PB: predicated region body
PF: predicated region fallthrough
CT: control target
= control target key end

     0   :  { %s1861_s15 = smov 0   ;;  %s1863_s16 = smov 0   ;;  %s2271_s0 = inlined_call_operand.vmem [shape: bf16[512,128], index: 0, kind: input, shape index: {}]   ;;  %s2272_s1 = inlined_call_operand.vmem [shape: bf16[128,128], index: 1, kind: input, shape index: {}]   ;;  %s2273_s2 = inlined_call_operand.vmem [shape: f32[2,128], index: 2, kind: input, shape index: {}]   ;;  %s2274_s3 = inlined_call_operand.vmem [shape: bf16[512,128], index: 3, kind: input, shape index: {}]   ;;  %s2275_s4 = inlined_call_operand.vmem [shape: f32[512,128], index: 4, kind: output, shape index: {}]  }
   0x1   :  { %s1865_s17 = smov 0  }
   0x2 LB: > { %s33_s18 = sadd.s32 1, %s1830_s16  ;;  %p1403_p0 = scmp.ge.s32.totalorder %s1834_s17, 1  ;;  %s1834_s17 = sphi %s1865_s17, %s14_s17   ;;  %s1830_s16 = sphi %s1863_s16, %s2283_s16   ;;  %s1826_s15 = sphi %s1861_s15, %s2282_s15  }
   0x3   : > { %p35_p1 = scmp.ge.s32.totalorder %s33_s18, 2  ;;  %p230_p2 = scmp.lt.s32.totalorder %s1834_s17, 3 }
   0x5   : > { %s2285_s18 = smov (%p35_p1, %s33_s18), 0  ;;  %p231_p3 = pnand %p1403_p0, %p230_p2 }
   0x6   : > { %s1404_s21 = sshll.u32 (!%p231_p3), %s1826_s15, 5 }
   0x7   : > { %234 = sbr.rel (%p231_p3) target bundleno = 339 (0x153), region = 36  ;;  %p283_p4 = scmp.lt.s32.totalorder (!%p231_p3), %s1404_s21, 63 }
   0xc   : > { %v1660_v0 = vld [vmem:[%s2272_s1 + $0x38] sm:$0xff]   ;;  %v1661_v1 = vld [vmem:[%s2272_s1 + $0x30] sm:$0xff]   ;;  %s2287_s21 = smov (!%p283_p4, %s1404_s21), 63  ;;  %v1662_v2 = vld [vmem:[%s2272_s1 + $0x28] sm:$0xff]   ;;  %v844_v24 = vlaneseq }
   0xd   : > { %1571 = vmatprep.subr.bf16.mxu0 %v1660_v0  ;;  %1619 = vmatprep.subr.bf16.mxu1 %v1660_v0  ;;  %s1405_s26 = sshll.u32 %s2287_s21, 2  ;;  %v1663_v3 = vld [vmem:[%s2272_s1 + $0x20] sm:$0xff]   ;;  %v1664_v6 = vld [vmem:[%s2272_s1 + $0x18] sm:$0xff]   ;;  %v1665_v7 = vld [vmem:[%s2272_s1 + $0x10] sm:$0xff]   ;;  %s1409_s23 = sshll.u32 %s2287_s21, 3 }
   0xe   : > { %1572 = vmatpush3.bf16.msra.mxu0 %v1660_v0  ;;  %1627 = vmatpush3.bf16.msra.mxu1 %v1660_v0  ;;  %s1896_s29 = scalar_lea.vmem %s2271_s0, %s1405_s26  ;;  %v1666_v8 = vld [vmem:[%s2272_s1 + $0x8] sm:$0xff]   ;;  %v1667_v9 = vld [vmem:[%s2272_s1] sm:$0xff]   ;;  %v845_v25 = vshrl.u32 %v844_v24, 7  ;;  %s1934_s19 = scalar_lea.vmem %s2274_s3, %s1405_s26 }
   0xf   : > { %1573 = vmatprep.subr.bf16.mxu0 %v1661_v1  ;;  %1620 = vmatprep.subr.bf16.mxu1 %v1661_v1  ;;  %v1668_v4 = vld [vmem:[%s1896_s29] sm:$0xff]   ;;  %v1670_v10 = vld [vmem:[%s1896_s29 + $0x8] sm:$0xff]   ;;  %v1672_v12 = vld [vmem:[%s1896_s29 + $0x10] sm:$0xff]   ;;  %s2122_s25 = scalar_lea.vmem %s2275_s4, %s1409_s23 }
  0x10   : > { %v1669_v5 = vld [vmem:[%s1896_s29 + $0x40] sm:$0xff]   ;;  %1587 = vmatprep.mubr.bf16.mxu0 %v1668_v4  ;;  %v1671_v11 = vld [vmem:[%s1896_s29 + $0x48] sm:$0xff]   ;;  %v1673_v13 = vld [vmem:[%s1896_s29 + $0x50] sm:$0xff]   ;;  %v846_v26 = vsub.s32 0, %v845_v25  ;;  %v882_v28 = vsub.s32 1, %v845_v25 }
  0x11   : > { %1603 = vmatprep.mubr.bf16.mxu1 %v1669_v5  ;;  %v1674_v14 = vld [vmem:[%s1896_s29 + $0x18] sm:$0xff]   ;;  %v1676_v16 = vld [vmem:[%s1896_s29 + $0x20] sm:$0xff]   ;;  %v1678_v18 = vld [vmem:[%s1896_s29 + $0x28] sm:$0xff]  }
  0x12   : > { %1574 = vmatpush3.bf16.msra.mxu0 %v1661_v1  ;;  %1628 = vmatpush3.bf16.msra.mxu1 %v1661_v1  ;;  %v1675_v15 = vld [vmem:[%s1896_s29 + $0x58] sm:$0xff]   ;;  %v1677_v17 = vld [vmem:[%s1896_s29 + $0x60] sm:$0xff]   ;;  %v1679_v19 = vld [vmem:[%s1896_s29 + $0x68] sm:$0xff]  }
  0x13   : > { %1575 = vmatprep.subr.bf16.mxu0 %v1662_v2  ;;  %1621 = vmatprep.subr.bf16.mxu1 %v1662_v2  ;;  %v1680_v20 = vld [vmem:[%s1896_s29 + $0x30] sm:$0xff]   ;;  %v1682_v22 = vld [vmem:[%s1896_s29 + $0x38] sm:$0xff]   ;;  %v811_v27 = vld [vmem:[%s2273_s2] sm:$0x3] }
  0x14   : > { %v1681_v21 = vld [vmem:[%s1896_s29 + $0x70] sm:$0xff]   ;;  %v1683_v23 = vld [vmem:[%s1896_s29 + $0x78] sm:$0xff]   ;;  %v1940_v29 = vld [vmem:[%s1934_s19 + $0x8] sm:$0xff]   ;;  %v1948_v32 = vrot.slane %v811_v27, %v846_v26  ;;  %v1953_v35 = vrot.slane %v811_v27, %v882_v28 }
  0x15   : > { %v1943_v30 = vld [vmem:[%s1934_s19 + $0x48] sm:$0xff]   ;;  %v1946_v31 = vld [vmem:[%s1934_s19] sm:$0xff]   ;;  %v1474_v36 = vunpack.c.l.bf16 %v1940_v29  ;;  %v1959_v40 = vld [vmem:[%s1934_s19 + $0x18] sm:$0xff]   ;;  %v1475_v46 = vunpack.c.h.bf16 %v1940_v29 }
  0x16   : > { %1576 = vmatpush3.bf16.msra.mxu0 %v1662_v2  ;;  %1629 = vmatpush3.bf16.msra.mxu1 %v1662_v2  ;;  %v1951_v33 = vld [vmem:[%s1934_s19 + $0x40] sm:$0xff]   ;;  %v1506_v38 = vunpack.c.l.bf16 %v1943_v30  ;;  %v1470_v39 = vunpack.c.l.bf16 %v1946_v31  ;;  %v1962_v41 = vld [vmem:[%s1934_s19 + $0x58] sm:$0xff]   ;;  %v1965_v42 = vld [vmem:[%s1934_s19 + $0x10] sm:$0xff]   ;;  %v1507_v47 = vunpack.c.h.bf16 %v1943_v30  ;;  %v1471_v48 = vunpack.c.h.bf16 %v1946_v31 }
  0x17   : > { %1577 = vmatprep.subr.bf16.mxu0 %v1663_v3  ;;  %1622 = vmatprep.subr.bf16.mxu1 %v1663_v3  ;;  %v1502_v45 = vunpack.c.l.bf16 %v1951_v33  ;;  %v1974_v51 = vld [vmem:[%s1934_s19 + $0x50] sm:$0xff]  }
  0x1a   : > { %1578 = vmatpush3.bf16.msra.mxu0 %v1663_v3  ;;  %1630 = vmatpush3.bf16.msra.mxu1 %v1663_v3 }
  0x1b   : > { %1579 = vmatprep.subr.bf16.mxu0 %v1664_v6  ;;  %1623 = vmatprep.subr.bf16.mxu1 %v1664_v6 }
  0x1e   : > { %1580 = vmatpush3.bf16.msra.mxu0 %v1664_v6  ;;  %1631 = vmatpush3.bf16.msra.mxu1 %v1664_v6 }
  0x1f   : > { %1581 = vmatprep.subr.bf16.mxu0 %v1665_v7  ;;  %1624 = vmatprep.subr.bf16.mxu1 %v1665_v7 }
  0x22   : > { %1582 = vmatpush3.bf16.msra.mxu0 %v1665_v7  ;;  %1632 = vmatpush3.bf16.msra.mxu1 %v1665_v7 }
  0x23   : > { %1583 = vmatprep.subr.bf16.mxu0 %v1666_v8  ;;  %1625 = vmatprep.subr.bf16.mxu1 %v1666_v8 }
  0x26   : > { %1584 = vmatpush3.bf16.msra.mxu0 %v1666_v8  ;;  %1633 = vmatpush3.bf16.msra.mxu1 %v1666_v8 }
  0x27   : > { %1585 = vmatprep.subr.bf16.mxu0 %v1667_v9  ;;  %1626 = vmatprep.subr.bf16.mxu1 %v1667_v9 }
  0x2a   : > { %1586 = vmatpush3.bf16.msra.mxu0 %v1667_v9  ;;  %1634 = vmatpush3.bf16.msra.mxu1 %v1667_v9 }
  0x2d   : > { %1588 = vmatmul.mubr.bf16.vlgmr.msra.gmra.mxu0 %v1670_v10  ;;  %1604 = vmatmul.mubr.bf16.vlgmr.msra.gmra.mxu1 %v1671_v11 }
  0x2e   : > { %1591 = vmatprep.mubr.bf16.mxu0 %v1672_v12  ;;  %1607 = vmatprep.mubr.bf16.mxu1 %v1673_v13 }
  0x35   : > { %1592 = vmatmul.mubr.bf16.gmra.mxu0 %v1674_v14  ;;  %1608 = vmatmul.mubr.bf16.gmra.mxu1 %v1675_v15 }
  0x36   : > { %1595 = vmatprep.mubr.bf16.mxu0 %v1676_v16  ;;  %1611 = vmatprep.mubr.bf16.mxu1 %v1677_v17 }
  0x3d   : > { %1596 = vmatmul.mubr.bf16.gmra.mxu0 %v1678_v18  ;;  %1612 = vmatmul.mubr.bf16.gmra.mxu1 %v1679_v19 }
  0x3e   : > { %1599 = vmatprep.mubr.bf16.mxu0 %v1680_v20  ;;  %1615 = vmatprep.mubr.bf16.mxu1 %v1681_v21 }
  0x45   : > { %1600 = vmatmul.mubr.bf16.gmra.mxu0 %v1682_v22  ;;  %1616 = vmatmul.mubr.bf16.gmra.mxu1 %v1683_v23 }
  0xed   : > { %v1589_v34 = vpop.f32.mrf.mxu0  ;;  %v1605_v37 = vpop.f32.mrf.mxu1 }
  0xee   : > { %v850_v49 = vmul.f32 %v1589_v34, %v1948_v32  ;;  %v866_v50 = vmul.f32 %v1605_v37, %v1948_v32 }
  0xef   : > { %v617_v43 = vpop.f32.mrf.mxu0  ;;  %v681_v44 = vpop.f32.mrf.mxu1 }
  0xf0   : > { %v1981_v58 = vadd.f32 %v1953_v35, %v850_v49  ;;  %v1984_v59 = vadd.f32 %v1953_v35, %v866_v50  ;;  %v848_v60 = vmul.f32 %v1948_v32, %v617_v43  ;;  %v864_v61 = vmul.f32 %v1948_v32, %v681_v44 }
  0xf1   : > { %v1590_v52 = vpop.f32.mrf.mxu0  ;;  %v1606_v53 = vpop.f32.mrf.mxu1 }
  0xf2   : > { %v1436_v2 = vmul.f32 -1.442695, %v1981_v58  ;;  %v1452_v3 = vmul.f32 -1.442695, %v1984_v59  ;;  %v1993_v4 = vadd.f32 %v1953_v35, %v848_v60  ;;  %v1996_v5 = vadd.f32 %v1953_v35, %v864_v61 }
  0xf3   : > { %v620_v62 = vpop.f32.mrf.mxu0  ;;  %v684_v63 = vpop.f32.mrf.mxu1  ;;  %v851_v6 = vmul.f32 %v1590_v52, %v1948_v32  ;;  %v867_v7 = vmul.f32 %v1606_v53, %v1948_v32 }
  0xf4   : > { %1684 = vpow2.f32 %v1436_v2  ;;  %v1434_v10 = vmul.f32 -1.442695, %v1993_v4  ;;  %v1450_v11 = vmul.f32 -1.442695, %v1996_v5  ;;  %v849_v14 = vmul.f32 %v1948_v32, %v620_v62 }
  0xf5   : > { %v1593_v8 = vpop.f32.mrf.mxu0  ;;  %v1609_v9 = vpop.f32.mrf.mxu1  ;;  %1686 = vpow2.f32 %v1452_v3  ;;  %v2003_v12 = vadd.f32 %v1953_v35, %v851_v6  ;;  %v2006_v13 = vadd.f32 %v1953_v35, %v867_v7  ;;  %v865_v17 = vmul.f32 %v1948_v32, %v684_v63 }
  0xf6   : > { %1688 = vpow2.f32 %v1434_v10  ;;  %v854_v18 = vmul.f32 %v1593_v8, %v1948_v32  ;;  %v2014_v21 = vadd.f32 %v1953_v35, %v849_v14  ;;  %v870_v26 = vmul.f32 %v1609_v9, %v1948_v32 }
  0xf7   : > { %v633_v15 = vpop.f32.mrf.mxu0  ;;  %v697_v16 = vpop.f32.mrf.mxu1  ;;  %1690 = vpow2.f32 %v1450_v11  ;;  %v1437_v19 = vmul.f32 -1.442695, %v2003_v12  ;;  %v1453_v20 = vmul.f32 -1.442695, %v2006_v13  ;;  %v2017_v24 = vadd.f32 %v1953_v35, %v865_v17 }
  0xf8   : > { %v2020_v25 = vadd.f32 %v1953_v35, %v854_v18  ;;  %v1435_v27 = vmul.f32 -1.442695, %v2014_v21  ;;  %v2027_v44 = vadd.f32 %v1953_v35, %v870_v26  ;;  %v852_v49 = vmul.f32 %v1948_v32, %v633_v15 }
  0xf9   : > { %v1594_v22 = vpop.f32.mrf.mxu0  ;;  %v1610_v23 = vpop.f32.mrf.mxu1  ;;  %1692 = vpow2.f32 %v1437_v19  ;;  %v1451_v37 = vmul.f32 -1.442695, %v2017_v24  ;;  %v868_v50 = vmul.f32 %v1948_v32, %v697_v16 }
  0xfa   : > { %1694 = vpow2.f32 %v1453_v20  ;;  %v1440_v43 = vmul.f32 -1.442695, %v2020_v25  ;;  %v855_v52 = vmul.f32 %v1594_v22, %v1948_v32  ;;  %v1456_v61 = vmul.f32 -1.442695, %v2027_v44 }
  0xfb   : > { %v636_v28 = vpop.f32.mrf.mxu0  ;;  %v700_v34 = vpop.f32.mrf.mxu1  ;;  %1696 = vpow2.f32 %v1435_v27  ;;  %v2034_v62 = vadd.f32 %v1953_v35, %v852_v49  ;;  %v2037_v63 = vadd.f32 %v1953_v35, %v868_v50  ;;  %v871_v3 = vmul.f32 %v1610_v23, %v1948_v32 }
  0xfc   : > { %1698 = vpow2.f32 %v1451_v37  ;;  %v2040_v2 = vadd.f32 %v1953_v35, %v855_v52  ;;  %v853_v6 = vmul.f32 %v1948_v32, %v636_v28  ;;  %v869_v16 = vmul.f32 %v1948_v32, %v700_v34 }
  0xfd   : > { %v1597_v53 = vpop.f32.mrf.mxu0  ;;  %v1613_v60 = vpop.f32.mrf.mxu1  ;;  %1700 = vpow2.f32 %v1440_v43  ;;  %v1438_v9 = vmul.f32 -1.442695, %v2034_v62  ;;  %v1454_v10 = vmul.f32 -1.442695, %v2037_v63  ;;  %v2048_v14 = vadd.f32 %v1953_v35, %v871_v3 }
  0xfe   : > { %1702 = vpow2.f32 %v1456_v61  ;;  %v1441_v11 = vmul.f32 -1.442695, %v2040_v2  ;;  %v2051_v15 = vadd.f32 %v1953_v35, %v853_v6  ;;  %v858_v18 = vmul.f32 %v1597_v53, %v1948_v32 }
  0xff   : > { %v649_v7 = vpop.f32.mrf.mxu0  ;;  %v713_v8 = vpop.f32.mrf.mxu1  ;;  %1704 = vpow2.f32 %v1438_v9  ;;  %v1457_v22 = vmul.f32 -1.442695, %v2048_v14  ;;  %v2058_v37 = vadd.f32 %v1953_v35, %v869_v16  ;;  %v874_v52 = vmul.f32 %v1613_v60, %v1948_v32 }
 0x100   : > { %1706 = vpow2.f32 %v1454_v10  ;;  %v1439_v23 = vmul.f32 -1.442695, %v2051_v15  ;;  %v2061_v34 = vadd.f32 %v1953_v35, %v858_v18  ;;  %v856_v53 = vmul.f32 %v1948_v32, %v649_v7 }
 0x101   : > { %v1685_v17 = vpop.eup %1684  ;;  %v1598_v26 = vpop.f32.mrf.mxu0  ;;  %1708 = vpow2.f32 %v1441_v11  ;;  %v1455_v3 = vmul.f32 -1.442695, %v2058_v37  ;;  %v2070_v10 = vadd.f32 %v1953_v35, %v874_v52  ;;  %v872_v16 = vmul.f32 %v1948_v32, %v713_v8 }
 0x102   : > { %v1687_v19 = vpop.eup %1686  ;;  %v1014_v20 = vadd.f32 1.0, %v1685_v17  ;;  %v1614_v43 = vpop.f32.mrf.mxu1  ;;  %v2067_v6 = vmul.f32 -1.442695, %v2061_v34  ;;  %v2073_v11 = vadd.f32 %v1953_v35, %v856_v53  ;;  %v859_v8 = vmul.f32 %v1598_v26, %v1948_v32 }
 0x103   : > { %v1689_v27 = vpop.eup %1688  ;;  %v1030_v28 = vadd.f32 1.0, %v1687_v19  ;;  %v652_v60 = vpop.f32.mrf.mxu0  ;;  %v2083_v52 = vadd.f32 %v1953_v35, %v872_v16 }
 0x104   : > { %v1691_v49 = vpop.eup %1690  ;;  %1710 = vrcp.f32 %v1014_v20  ;;  %v1012_v50 = vadd.f32 1.0, %v1689_v27  ;;  %v716_v18 = vpop.f32.mrf.mxu1  ;;  %v2077_v27 = vmul.f32 -1.442695, %v2070_v10  ;;  %v2089_v57 = vadd.f32 %v1953_v35, %v859_v8 }
 0x105   : > { %1712 = vrcp.f32 %v1030_v28  ;;  %v1028_v61 = vadd.f32 1.0, %v1691_v49  ;;  %v2080_v28 = vmul.f32 -1.442695, %v2073_v11  ;;  %v1458_v0 = vmul.f32 -1.442695, %v2083_v52 }
 0x106   : > { %v1693_v9 = vpop.eup %1692  ;;  %1714 = vrcp.f32 %v1012_v50 }
 0x107   : > { %v1695_v17 = vpop.eup %1694  ;;  %1716 = vrcp.f32 %v1028_v61  ;;  %v1015_v7 = vadd.f32 1.0, %v1693_v9  ;;  %v875_v9 = vmul.f32 %v1614_v43, %v1948_v32  ;;  %v2096_v43 = vmul.f32 -1.442695, %v2089_v57 }
 0x108   : > { %v1697_v19 = vpop.eup %1696  ;;  %v1031_v20 = vadd.f32 1.0, %v1695_v17  ;;  %1718 = vpow2.f32 %v1457_v22  ;;  %v1601_v22 = vpop.f32.mrf.mxu0 }
 0x109   : > { %v1699_v49 = vpop.eup %1698  ;;  %1720 = vrcp.f32 %v1015_v7  ;;  %v1013_v50 = vadd.f32 1.0, %v1697_v19  ;;  %v1617_v7 = vpop.f32.mrf.mxu1  ;;  %v2092_v26 = vadd.f32 %v1953_v35, %v875_v9  ;;  %v857_v19 = vmul.f32 %v1948_v32, %v652_v60 }
 0x10a   : > { %v1701_v53 = vpop.eup %1700  ;;  %1722 = vrcp.f32 %v1031_v20  ;;  %v1029_v61 = vadd.f32 1.0, %v1699_v49  ;;  %v862_v9 = vmul.f32 %v1601_v22, %v1948_v32  ;;  %v665_v60 = vpop.f32.mrf.mxu0  ;;  %v878_v56 = vmul.f32 %v1617_v7, %v1948_v32 }
 0x10b   : > { %v1703_v17 = vpop.eup %1702  ;;  %1724 = vrcp.f32 %v1013_v50  ;;  %v1018_v1 = vadd.f32 1.0, %v1701_v53  ;;  %v2099_v49 = vmul.f32 -1.442695, %v2092_v26  ;;  %v2102_v50 = vadd.f32 %v1953_v35, %v857_v19 }
 0x10c   : > { %1726 = vrcp.f32 %v1029_v61  ;;  %v1034_v16 = vadd.f32 1.0, %v1703_v17  ;;  %v1705_v20 = vpop.eup %1704  ;;  %v873_v61 = vmul.f32 %v1948_v32, %v716_v18 }
 0x10d   : > { %1728 = vrcp.f32 %v1018_v1  ;;  %v1707_v8 = vpop.eup %1706  ;;  %v1016_v53 = vadd.f32 1.0, %v1705_v20  ;;  %v2117_v20 = vadd.f32 %v1953_v35, %v878_v56 }
 0x10e   : > { %1730 = vrcp.f32 %v1034_v16  ;;  %v1709_v1 = vpop.eup %1708  ;;  %v1032_v17 = vadd.f32 1.0, %v1707_v8  ;;  %v1443_v16 = vmul.f32 -1.442695, %v2102_v50  ;;  %v2110_v54 = vadd.f32 %v1953_v35, %v873_v61  ;;  %v729_v61 = vpop.f32.mrf.mxu1 }
 0x10f   : > { %1732 = vpow2.f32 %v1439_v23  ;;  %v1019_v19 = vadd.f32 1.0, %v1709_v1  ;;  %v2113_v23 = vadd.f32 %v1953_v35, %v862_v9  ;;  %v1464_v9 = vmul.f32 -1.442695, %v2117_v20 }
 0x110   : > { %1734 = vpow2.f32 %v1455_v3  ;;  %v1459_v8 = vmul.f32 -1.442695, %v2110_v54 }
 0x111   : > { %v1711_v55 = vpop.eup %1710  ;;  %1736 = vrcp.f32 %v1016_v53  ;;  %v1448_v53 = vmul.f32 -1.442695, %v2113_v23 }
 0x112   : > { %v1713_v18 = vpop.eup %1712  ;;  %v1110_v22 = vmul.f32 %v1711_v55, %v1981_v58  ;;  %1738 = vrcp.f32 %v1032_v17 }
 0x113   : > { %v1715_v3 = vpop.eup %1714  ;;  %v1126_v7 = vmul.f32 %v1713_v18, %v1984_v59  ;;  %1740 = vrcp.f32 %v1019_v19  ;;  %v860_v19 = vmul.f32 %v1948_v32, %v665_v60  ;;  %v1602_v18 = vpop.f32.mrf.mxu0 }
 0x114   : > { %v1717_v55 = vpop.eup %1716  ;;  %v1206_v56 = vadd.f32 %v1474_v36, %v1110_v22  ;;  %v1108_v58 = vmul.f32 %v1715_v3, %v1993_v4  ;;  %1742 = vpow2.f32 %v2067_v6 }
 0x115   : > { %v1719_v1 = vpop.eup %1718  ;;  %v1222_v59 = vadd.f32 %v1506_v38, %v1126_v7  ;;  %v1124_v17 = vmul.f32 %v1717_v55, %v1996_v5  ;;  %1744 = vpow2.f32 %v2077_v27  ;;  %v2146_v27 = vadd.f32 %v1953_v35, %v860_v19 }
 0x116   : > { %v1721_v36 = vpop.eup %1720  ;;  %1238 = vst [vmem:[%s2122_s25 + $0x10] sm:$0xff] %v1206_v56  ;;  %v1204_v4 = vadd.f32 %v1470_v39, %v1108_v58  ;;  %v1035_v6 = vadd.f32 1.0, %v1719_v1  ;;  %1746 = vpow2.f32 %v2080_v28  ;;  %v876_v39 = vmul.f32 %v1948_v32, %v729_v61  ;;  %v668_v1 = vpop.f32.mrf.mxu0 }
 0x117   : > { %v1723_v22 = vpop.eup %1722  ;;  %1254 = vst [vmem:[%s2122_s25 + $0x90] sm:$0xff] %v1222_v59  ;;  %v1220_v38 = vadd.f32 %v1502_v45, %v1124_v17  ;;  %v1111_v5 = vmul.f32 %v1721_v36, %v2003_v12  ;;  %1748 = vpow2.f32 %v1458_v0  ;;  %v1446_v0 = vmul.f32 -1.442695, %v2146_v27  ;;  %v1618_v12 = vpop.f32.mrf.mxu1 }
 0x118   : > { %v1725_v60 = vpop.eup %1724  ;;  %1236 = vst [vmem:[%s2122_s25] sm:$0xff] %v1204_v4  ;;  %v1127_v3 = vmul.f32 %v1723_v22, %v2006_v13  ;;  %1750 = vrcp.f32 %v1035_v6  ;;  %v2162_v29 = vadd.f32 %v1953_v35, %v876_v39  ;;  %v863_v61 = vmul.f32 %v1602_v18, %v1948_v32 }
 0x119   : > { %v1727_v28 = vpop.eup %1726  ;;  %1252 = vst [vmem:[%s2122_s25 + $0x80] sm:$0xff] %v1220_v38  ;;  %v1207_v7 = vadd.f32 %v1475_v46, %v1111_v5  ;;  %v1109_v45 = vmul.f32 %v1725_v60, %v2014_v21  ;;  %1752 = vpow2.f32 %v2096_v43  ;;  %v879_v22 = vmul.f32 %v1618_v12, %v1948_v32 }
 0x11a   : > { %v1729_v55 = vpop.eup %1728  ;;  %v1223_v13 = vadd.f32 %v1507_v47, %v1127_v3  ;;  %v1125_v56 = vmul.f32 %v1727_v28, %v2017_v24  ;;  %1754 = vpow2.f32 %v2099_v49  ;;  %v2276_v47 = vunpack.c.h.bf16 %v1951_v33  ;;  %v732_v33 = vpop.f32.mrf.mxu1 }
 0x11b   : > { %v1731_v46 = vpop.eup %1730  ;;  %1239 = vst [vmem:[%s2122_s25 + $0x18] sm:$0xff] %v1207_v7  ;;  %v1205_v21 = vadd.f32 %v1471_v48, %v1109_v45  ;;  %v1114_v43 = vmul.f32 %v1729_v55, %v2020_v25  ;;  %1756 = vpow2.f32 %v1443_v16  ;;  %v1462_v58 = vmul.f32 -1.442695, %v2162_v29 }
 0x11c   : > { %v1733_v30 = vpop.eup %1732  ;;  %1255 = vst [vmem:[%s2122_s25 + $0x98] sm:$0xff] %v1223_v13  ;;  %v1221_v24 = vadd.f32 %v2276_v47, %v1125_v56  ;;  %v1130_v49 = vmul.f32 %v1731_v46, %v2027_v44  ;;  %1758 = vpow2.f32 %v1459_v8  ;;  %v2277_v48 = vunpack.c.l.bf16 %v1959_v40 }
 0x11d   : > { %v1735_v31 = vpop.eup %1734  ;;  %1237 = vst [vmem:[%s2122_s25 + $0x8] sm:$0xff] %v1205_v21  ;;  %v1017_v16 = vadd.f32 1.0, %v1733_v30  ;;  %1760 = vpow2.f32 %v1448_v53  ;;  %v2178_v59 = vadd.f32 %v1953_v35, %v863_v61  ;;  %v2278_v44 = vunpack.c.l.bf16 %v1962_v41 }
 0x11e   : > { %v1210_v25 = vadd.f32 %v2277_v48, %v1114_v43  ;;  %v1737_v17 = vpop.eup %1736  ;;  %1253 = vst [vmem:[%s2122_s25 + $0x88] sm:$0xff] %v1221_v24  ;;  %v1033_v19 = vadd.f32 1.0, %v1735_v31  ;;  %1762 = vpow2.f32 %v1464_v9  ;;  %v2279_v5 = vunpack.c.l.bf16 %v1965_v42 }
 0x11f   : > { %v1226_v8 = vadd.f32 %v2278_v44, %v1130_v49  ;;  %v1739_v18 = vpop.eup %1738  ;;  %v1112_v36 = vmul.f32 %v1737_v17, %v2034_v62  ;;  %1764 = vrcp.f32 %v1017_v16  ;;  %v1449_v4 = vmul.f32 -1.442695, %v2178_v59 }
 0x120   : > { %1242 = vst [vmem:[%s2122_s25 + $0x30] sm:$0xff] %v1210_v25  ;;  %v1741_v6 = vpop.eup %1740  ;;  %v1128_v53 = vmul.f32 %v1739_v18, %v2037_v63  ;;  %1766 = vrcp.f32 %v1033_v19  ;;  %v1515_v62 = vunpack.c.h.bf16 %v1962_v41  ;;  %v2280_v39 = vunpack.c.l.bf16 %v1974_v51 }
 0x121   : > { %1258 = vst [vmem:[%s2122_s25 + $0xb0] sm:$0xff] %v1226_v8  ;;  %v1743_v38 = vpop.eup %1742  ;;  %v1208_v60 = vadd.f32 %v2279_v5, %v1112_v36  ;;  %v1115_v9 = vmul.f32 %v1741_v6, %v2040_v2  ;;  %1768 = vpow2.f32 %v1446_v0  ;;  %v2196_v63 = vadd.f32 %v1953_v35, %v879_v22  ;;  %v1536_v6 = vld [vmem:[%s1934_s19 + $0x28] sm:$0xff]  }
 0x122   : > { %v1745_v3 = vpop.eup %1744  ;;  %v1224_v28 = vadd.f32 %v2280_v39, %v1128_v53  ;;  %v1022_v7 = vadd.f32 1.0, %v1743_v38  ;;  %1770 = vpow2.f32 %v1462_v58  ;;  %v2281_v12 = vunpack.c.h.bf16 %v1959_v40  ;;  %v1544_v22 = vld [vmem:[%s1934_s19 + $0x68] sm:$0xff]   ;;  %v1543_v39 = vld [vmem:[%s1934_s19 + $0x60] sm:$0xff]  }
 0x123   : > { %v1747_v45 = vpop.eup %1746  ;;  %1240 = vst [vmem:[%s2122_s25 + $0x20] sm:$0xff] %v1208_v60  ;;  %v1038_v13 = vadd.f32 1.0, %v1745_v3  ;;  %1772 = vpow2.f32 %v1449_v4  ;;  %v861_v41 = vmul.f32 %v1948_v32, %v668_v1  ;;  %v1465_v56 = vmul.f32 -1.442695, %v2196_v63 }
 0x124   : > { %v1211_v55 = vadd.f32 %v2281_v12, %v1115_v9  ;;  %v1749_v2 = vpop.eup %1748  ;;  %1256 = vst [vmem:[%s2122_s25 + $0xa0] sm:$0xff] %v1224_v28  ;;  %1774 = vrcp.f32 %v1022_v7  ;;  %v1020_v0 = vadd.f32 1.0, %v1747_v45  ;;  %v877_v46 = vmul.f32 %v1948_v32, %v732_v33 }
 0x125   : > { %v1751_v21 = vpop.eup %1750  ;;  %1776 = vrcp.f32 %v1038_v13  ;;  %v1036_v43 = vadd.f32 1.0, %v1749_v2  ;;  %v2208_v24 = vadd.f32 %v1953_v35, %v861_v41  ;;  %v1479_v33 = vunpack.c.h.bf16 %v1965_v42 }
 0x126   : > { %1243 = vst [vmem:[%s2122_s25 + $0x38] sm:$0xff] %v1211_v55  ;;  %v1753_v61 = vpop.eup %1752  ;;  %v1131_v40 = vmul.f32 %v1751_v21, %v2048_v14  ;;  %1778 = vrcp.f32 %v1020_v0  ;;  %v2211_v32 = vadd.f32 %v1953_v35, %v877_v46  ;;  %v1511_v35 = vunpack.c.h.bf16 %v1974_v51  ;;  %v1535_v51 = vld [vmem:[%s1934_s19 + $0x20] sm:$0xff]  }
 0x127   : > { %v1755_v30 = vpop.eup %1754  ;;  %1780 = vrcp.f32 %v1036_v43  ;;  %v1023_v47 = vadd.f32 1.0, %v1753_v61  ;;  %v1447_v44 = vmul.f32 -1.442695, %v2208_v24  ;;  %v1490_v3 = vunpack.c.l.bf16 %v1536_v6 }
 0x128   : > { %v1757_v49 = vpop.eup %1756  ;;  %v1227_v58 = vadd.f32 %v1515_v62, %v1131_v40  ;;  %v1039_v1 = vadd.f32 1.0, %v1755_v30  ;;  %1782 = vpow2.f32 %v1465_v56  ;;  %v1463_v18 = vmul.f32 -1.442695, %v2211_v32 }
 0x129   : > { %v1759_v31 = vpop.eup %1758  ;;  %1784 = vrcp.f32 %v1023_v47  ;;  %v1021_v48 = vadd.f32 1.0, %v1757_v49  ;;  %v1522_v7 = vunpack.c.l.bf16 %v1544_v22  ;;  %v1486_v55 = vunpack.c.l.bf16 %v1535_v51 }
 0x12a   : > { %v1761_v25 = vpop.eup %1760  ;;  %1259 = vst [vmem:[%s2122_s25 + $0xb8] sm:$0xff] %v1227_v58  ;;  %1786 = vrcp.f32 %v1039_v1  ;;  %v1037_v14 = vadd.f32 1.0, %v1759_v31  ;;  %v1518_v2 = vunpack.c.l.bf16 %v1543_v39  ;;  %v1523_v47 = vunpack.c.h.bf16 %v1544_v22 }
 0x12b   : > { %v1763_v16 = vpop.eup %1762  ;;  %1788 = vrcp.f32 %v1021_v48  ;;  %v1026_v17 = vadd.f32 1.0, %v1761_v25  ;;  %v1546_v48 = vld [vmem:[%s1934_s19 + $0x78] sm:$0xff]  }
 0x12c   : > { %v1765_v8 = vpop.eup %1764  ;;  %1790 = vrcp.f32 %v1037_v14  ;;  %v1042_v19 = vadd.f32 1.0, %v1763_v16  ;;  %v1519_v14 = vunpack.c.h.bf16 %v1543_v39 }
 0x12d   : > { %v1767_v36 = vpop.eup %1766  ;;  %v1113_v4 = vmul.f32 %v1765_v8, %v2051_v15  ;;  %1792 = vrcp.f32 %v1026_v17 }
 0x12e   : > { %v1769_v53 = vpop.eup %1768  ;;  %v1129_v42 = vmul.f32 %v1767_v36, %v2058_v37  ;;  %1794 = vrcp.f32 %v1042_v19  ;;  %v1530_v19 = vunpack.c.l.bf16 %v1546_v48 }
 0x12f   : > { %v1771_v38 = vpop.eup %1770  ;;  %v1209_v5 = vadd.f32 %v1479_v33, %v1113_v4  ;;  %v1024_v60 = vadd.f32 1.0, %v1769_v53  ;;  %1796 = vpow2.f32 %v1447_v44 }
 0x130   : > { %v1773_v9 = vpop.eup %1772  ;;  %v1225_v62 = vadd.f32 %v1511_v35, %v1129_v42  ;;  %v1040_v28 = vadd.f32 1.0, %v1771_v38  ;;  %1798 = vpow2.f32 %v1463_v18  ;;  %v1537_v18 = vld [vmem:[%s1934_s19 + $0x30] sm:$0xff]  }
 0x131   : > { %v1775_v15 = vpop.eup %1774  ;;  %1241 = vst [vmem:[%s2122_s25 + $0x28] sm:$0xff] %v1209_v5  ;;  %1800 = vrcp.f32 %v1024_v60  ;;  %v1027_v45 = vadd.f32 1.0, %v1773_v9 }
 0x132   : > { %v1777_v37 = vpop.eup %1776  ;;  %1257 = vst [vmem:[%s2122_s25 + $0xa8] sm:$0xff] %v1225_v62  ;;  %v1118_v12 = vmul.f32 %v1775_v15, %v2061_v34  ;;  %1802 = vrcp.f32 %v1040_v28  ;;  %v1491_v34 = vunpack.c.h.bf16 %v1536_v6  ;;  %v1545_v6 = vld [vmem:[%s1934_s19 + $0x70] sm:$0xff]  }
 0x133   : > { %v1779_v13 = vpop.eup %1778  ;;  %v1134_v41 = vmul.f32 %v1777_v37, %v2070_v10  ;;  %1804 = vrcp.f32 %v1027_v45  ;;  %v1538_v10 = vld [vmem:[%s1934_s19 + $0x38] sm:$0xff]   ;;  %v1526_v9 = vunpack.c.l.bf16 %v1545_v6 }
 0x134   : > { %v1781_v0 = vpop.eup %1780  ;;  %v1214_v56 = vadd.f32 %v1490_v3, %v1118_v12  ;;  %v1116_v46 = vmul.f32 %v1779_v13, %v2073_v11  ;;  %v1487_v11 = vunpack.c.h.bf16 %v1535_v51  ;;  %v1498_v44 = vunpack.c.l.bf16 %v1538_v10 }
 0x135   : > { %v1783_v21 = vpop.eup %1782  ;;  %v1230_v43 = vadd.f32 %v1522_v7, %v1134_v41  ;;  %v1132_v61 = vmul.f32 %v1781_v0, %v2083_v52  ;;  %v1499_v39 = vunpack.c.h.bf16 %v1538_v10  ;;  %v1531_v12 = vunpack.c.h.bf16 %v1546_v48 }
 0x136   : > { %v1785_v40 = vpop.eup %1784  ;;  %1246 = vst [vmem:[%s2122_s25 + $0x50] sm:$0xff] %v1214_v56  ;;  %v1212_v30 = vadd.f32 %v1486_v55, %v1116_v46  ;;  %v1043_v49 = vadd.f32 1.0, %v1783_v21  ;;  %v1495_v41 = vunpack.c.h.bf16 %v1537_v18 }
 0x137   : > { %v1787_v58 = vpop.eup %1786  ;;  %1262 = vst [vmem:[%s2122_s25 + $0xd0] sm:$0xff] %v1230_v43  ;;  %v1228_v1 = vadd.f32 %v1518_v2, %v1132_v61  ;;  %v1119_v31 = vmul.f32 %v1785_v40, %v2089_v57 }
 0x138   : > { %v1789_v25 = vpop.eup %1788  ;;  %1244 = vst [vmem:[%s2122_s25 + $0x40] sm:$0xff] %v1212_v30  ;;  %v1135_v52 = vmul.f32 %v1787_v58, %v2092_v26  ;;  %1806 = vrcp.f32 %v1043_v49 }
 0x139   : > { %v1791_v16 = vpop.eup %1790  ;;  %1260 = vst [vmem:[%s2122_s25 + $0xc0] sm:$0xff] %v1228_v1  ;;  %v1215_v33 = vadd.f32 %v1491_v34, %v1119_v31  ;;  %v1117_v17 = vmul.f32 %v1789_v25, %v2102_v50 }
 0x13a   : > { %v1793_v57 = vpop.eup %1792  ;;  %v1231_v8 = vadd.f32 %v1523_v47, %v1135_v52  ;;  %v1133_v35 = vmul.f32 %v1791_v16, %v2110_v54  ;;  %v1494_v54 = vunpack.c.l.bf16 %v1537_v18 }
 0x13b   : > { %v1795_v36 = vpop.eup %1794  ;;  %1247 = vst [vmem:[%s2122_s25 + $0x58] sm:$0xff] %v1215_v33  ;;  %v1213_v26 = vadd.f32 %v1487_v11, %v1117_v17  ;;  %v1122_v4 = vmul.f32 %v1793_v57, %v2113_v23 }
 0x13c   : > { %v1797_v53 = vpop.eup %1796  ;;  %1263 = vst [vmem:[%s2122_s25 + $0xd8] sm:$0xff] %v1231_v8  ;;  %v1229_v42 = vadd.f32 %v1519_v14, %v1133_v35  ;;  %v1138_v50 = vmul.f32 %v1795_v36, %v2117_v20 }
 0x13d   : > { %v1799_v22 = vpop.eup %1798  ;;  %1245 = vst [vmem:[%s2122_s25 + $0x48] sm:$0xff] %v1213_v26  ;;  %v1218_v38 = vadd.f32 %v1498_v44, %v1122_v4  ;;  %v1025_v5 = vadd.f32 1.0, %v1797_v53 }
 0x13e   : > { %v1801_v51 = vpop.eup %1800  ;;  %1261 = vst [vmem:[%s2122_s25 + $0xc8] sm:$0xff] %v1229_v42  ;;  %v1234_v60 = vadd.f32 %v1530_v19, %v1138_v50  ;;  %v1041_v23 = vadd.f32 1.0, %v1799_v22 }
 0x13f   : > { %v1803_v62 = vpop.eup %1802  ;;  %1250 = vst [vmem:[%s2122_s25 + $0x70] sm:$0xff] %v1218_v38  ;;  %v1120_v3 = vmul.f32 %v1801_v51, %v2146_v27  ;;  %1808 = vrcp.f32 %v1025_v5 }
 0x140   : > { %v1805_v20 = vpop.eup %1804  ;;  %1266 = vst [vmem:[%s2122_s25 + $0xf0] sm:$0xff] %v1234_v60  ;;  %v1136_v28 = vmul.f32 %v1803_v62, %v2162_v29  ;;  %1810 = vrcp.f32 %v1041_v23  ;;  %v1527_v29 = vunpack.c.h.bf16 %v1545_v6 }
 0x141   : > { %v1216_v15 = vadd.f32 %v1494_v54, %v1120_v3  ;;  %v1123_v7 = vmul.f32 %v1805_v20, %v2178_v59 }
 0x142   : > { %v1232_v45 = vadd.f32 %v1526_v9, %v1136_v28 }
 0x143   : > { %1248 = vst [vmem:[%s2122_s25 + $0x60] sm:$0xff] %v1216_v15  ;;  %v1219_v37 = vadd.f32 %v1499_v39, %v1123_v7 }
 0x144   : > { %1264 = vst [vmem:[%s2122_s25 + $0xe0] sm:$0xff] %v1232_v45 }
 0x145   : > { %v1807_v55 = vpop.eup %1806  ;;  %1251 = vst [vmem:[%s2122_s25 + $0x78] sm:$0xff] %v1219_v37 }
 0x146   : > { %v1139_v27 = vmul.f32 %v1807_v55, %v2196_v63 }
 0x148   : > { %v1235_v13 = vadd.f32 %v1531_v12, %v1139_v27 }
 0x14a   : > { %1267 = vst [vmem:[%s2122_s25 + $0xf8] sm:$0xff] %v1235_v13 }
 0x14c   : > { %v1809_v2 = vpop.eup %1808 }
 0x14d   : > { %v1811_v0 = vpop.eup %1810  ;;  %v1121_v56 = vmul.f32 %v1809_v2, %v2208_v24 }
 0x14e   : > { %v1137_v59 = vmul.f32 %v1811_v0, %v2211_v32 }
 0x14f   : > { %v1217_v46 = vadd.f32 %v1495_v41, %v1121_v56 }
 0x150   : > { %v1233_v21 = vadd.f32 %v1527_v29, %v1137_v59 }
 0x151   : > { %1249 = vst [vmem:[%s2122_s25 + $0x68] sm:$0xff] %v1217_v46 }
 0x152   : > { %1265 = vst [vmem:[%s2122_s25 + $0xe8] sm:$0xff] %v1233_v21 }
 0x153 PF: > { %s14_s17 = sadd.s32 1, %s1834_s17   ;;  %s2282_s15 = smov %s1830_s16 }
 0x154   : > { %p11_p5 = scmp.ge.s32.totalorder %s14_s17, 4   ;;  %s2283_s16 = smov %s2285_s18 }
 0x156   :  { %13 = sbr.rel (!%p11_p5) target bundleno = 2 (0x2), region = 83 }

</bundles_post_ra>
